<compile_context>
chip_gen: v7x
topology: tpu7x:2x2x1
jax: 0.10.0
libtpu: 0.0.40
codegen_flags: <defaults>
</compile_context>

<pallas_src>
import math

import jax
import jax.numpy as jnp
import numpy as np
from jax.experimental import pallas as pl
from jax.experimental.pallas import tpu as pltpu

# ---------------- config (small, BART-like) ----------------
BATCH = 2
TGT_LEN = 8        # decoder sequence length
SRC_LEN = 8        # encoder sequence length
EMBED_DIM = 32     # d_model
NUM_HEADS = 4      # decoder_attention_heads
HEAD_DIM = EMBED_DIM // NUM_HEADS
FFN_DIM = 64       # decoder_ffn_dim
LN_EPS = 1e-5
SCALING = HEAD_DIM ** -0.5
MASK_NEG = -1e9    # additive-mask value for disallowed positions

# MXU operand dtype.  Keep f32 for the toy-shape 1e-4 check; switch to jnp.bfloat16
# for production shapes (accumulation stays f32 via preferred_element_type).
MXU_DTYPE = jnp.float32


def _gelu(x):
    # exact (erf-based) GELU, matching torch.nn.functional.gelu / HF ACT2FN["gelu"]
    return 0.5 * x * (1.0 + jax.lax.erf(x * (1.0 / math.sqrt(2.0))))


def _layernorm(x, g, b):
    mu = jnp.mean(x, axis=-1, keepdims=True)
    var = jnp.mean((x - mu) ** 2, axis=-1, keepdims=True)
    return (x - mu) * jax.lax.rsqrt(var + LN_EPS) * g + b


def _mm(a, b):
    """MXU matmul with f32 accumulation (operands optionally narrowed to MXU_DTYPE)."""
    return jnp.dot(a.astype(MXU_DTYPE), b.astype(MXU_DTYPE),
                   preferred_element_type=jnp.float32)


def _attend(q, k, v, mask):
    """Scores / softmax / context, head-batched over a leading H axis.

    q: (Tq, E), k/v: (Tk, E) -- already projected (full-width), bias added, q scaled.
    mask: (Tq, Tk) additive mask.  Returns (Tq, E) with heads re-concatenated so the
    caller can run one full-width out-projection.
    """
    H, D = NUM_HEADS, HEAD_DIM
    qh = jnp.stack([q[:, h * D:(h + 1) * D] for h in range(H)])   # (H, Tq, D)
    kh = jnp.stack([k[:, h * D:(h + 1) * D] for h in range(H)])   # (H, Tk, D)
    vh = jnp.stack([v[:, h * D:(h + 1) * D] for h in range(H)])   # (H, Tk, D)

    s = jnp.einsum('hqd,hkd->hqk', qh.astype(MXU_DTYPE), kh.astype(MXU_DTYPE),
                   preferred_element_type=jnp.float32)
    s = s + mask[None]                                   # mask add + softmax in f32
    s = s - jnp.max(s, axis=-1, keepdims=True)
    p = jnp.exp(s)
    p = p / jnp.sum(p, axis=-1, keepdims=True)

    ctx = jnp.einsum('hqk,hkd->hqd', p.astype(MXU_DTYPE), vh.astype(MXU_DTYPE),
                     preferred_element_type=jnp.float32)           # (H, Tq, D)
    return jnp.concatenate([ctx[h] for h in range(H)], axis=-1)    # (Tq, E)


def decoder_layer_kernel(
    x_ref,           # (1, T, E)   decoder hidden states for this batch element
    enc_ref,         # (1, S, E)   encoder hidden states for this batch element
    smask_ref,       # (1, T, T)   additive self-attention mask
    cmask_ref,       # (1, T, S)   additive cross-attention mask
    w_self_qkv_ref,  # (E, 3E)     fused self-attn Q|K|V weights (in, out)
    b_self_qkv_ref,  # (1, 3E)     fused self-attn Q|K|V biases
    w_cross_q_ref,   # (E, E)      cross-attn Q weights
    w_cross_kv_ref,  # (E, 2E)     fused cross-attn K|V weights
    b_cross_kv_ref,  # (1, 2E)     fused cross-attn K|V biases
    w_out_ref,       # (2, E, E)   [self out_proj, cross out_proj]
    wf1_ref,         # (E, FFN)
    bf1_ref,         # (1, FFN)
    wf2_ref,         # (FFN, E)
    vecs_ref,        # (10, E): [bq2, bo1, bo2, bf2, g1, be1, g2, be2, g3, be3]
    out_ref,         # (1, T, E)
):
    E = EMBED_DIM
    x = x_ref[0]          # (T, E)
    enc = enc_ref[0]      # (S, E)
    smask = smask_ref[0]  # (T, T)
    cmask = cmask_ref[0]  # (T, S)
    vecs = vecs_ref[...]

    bq2, bo1, bo2, bf2 = vecs[0:1], vecs[1:2], vecs[2:3], vecs[3:4]
    g1, be1 = vecs[4:5], vecs[5:6]
    g2, be2 = vecs[6:7], vecs[7:8]
    g3, be3 = vecs[8:9], vecs[9:10]

    # ---- self attention block ----
    residual = x
    qkv = _mm(x, w_self_qkv_ref[...]) + b_self_qkv_ref[...]        # (T, 3E)
    q = qkv[:, 0:E] * SCALING
    k = qkv[:, E:2 * E]
    v = qkv[:, 2 * E:3 * E]
    ctx = _attend(q, k, v, smask)
    h = _mm(ctx, w_out_ref[0]) + bo1
    h = _layernorm(residual + h, g1, be1)

    # ---- cross attention block ----
    residual = h
    q = (_mm(h, w_cross_q_ref[...]) + bq2) * SCALING
    kv = _mm(enc, w_cross_kv_ref[...]) + b_cross_kv_ref[...]       # (S, 2E)
    k = kv[:, 0:E]
    v = kv[:, E:2 * E]
    ctx = _attend(q, k, v, cmask)
    c = _mm(ctx, w_out_ref[1]) + bo2
    h = _layernorm(residual + c, g2, be2)

    # ---- feed forward block ----
    residual = h
    f = _gelu(_mm(h, wf1_ref[...]) + bf1_ref[...])
    f = _mm(f, wf2_ref[...]) + bf2
    h = _layernorm(residual + f, g3, be3)

    out_ref[0] = h.astype(out_ref.dtype)


def _batched_spec(shape):
    """Block indexed by the batch grid axis along dim 0."""
    nd = len(shape)
    return pl.BlockSpec(shape, lambda b: (b,) + (0,) * (nd - 1))


def _resident_spec(shape):
    """Constant index_map: DMA'd once, stays VMEM-resident across grid steps."""
    nd = len(shape)
    return pl.BlockSpec(shape, lambda b: (0,) * nd)


def bart_decoder_layer(hidden, enc_hidden, self_mask, cross_mask, params):
    (wq1, bq1, wk1, bk1, wv1, bv1, wo1, bo1, g1, be1,
     wq2, bq2, wk2, bk2, wv2, bv2, wo2, bo2, g2, be2,
     wf1, bf1, wf2, bf2, g3, be3) = params

    B, T, E = hidden.shape
    S = enc_hidden.shape[1]

    # --- wrapper-side packing (fused projections, lane-dense bias/vector slabs) ---
    w_self_qkv = jnp.concatenate([wq1, wk1, wv1], axis=1)      # (E, 3E)
    b_self_qkv = jnp.concatenate([bq1, bk1, bv1], axis=1)      # (1, 3E)
    w_cross_kv = jnp.concatenate([wk2, wv2], axis=1)           # (E, 2E)
    b_cross_kv = jnp.concatenate([bk2, bv2], axis=1)           # (1, 2E)
    w_out = jnp.stack([wo1, wo2])                              # (2, E, E)
    vecs = jnp.concatenate([bq2, bo1, bo2, bf2,
                            g1, be1, g2, be2, g3, be3], axis=0)  # (10, E)

    in_specs = [
        _batched_spec((1, T, E)),        # hidden
        _batched_spec((1, S, E)),        # encoder hidden
        _batched_spec((1, T, T)),        # self-attn mask (per batch, no block-diag)
        _batched_spec((1, T, S)),        # cross-attn mask
        _resident_spec(w_self_qkv.shape),
        _resident_spec(b_self_qkv.shape),
        _resident_spec(wq2.shape),
        _resident_spec(w_cross_kv.shape),
        _resident_spec(b_cross_kv.shape),
        _resident_spec(w_out.shape),
        _resident_spec(wf1.shape),
        _resident_spec(bf1.shape),
        _resident_spec(wf2.shape),
        _resident_spec(vecs.shape),
    ]

    out = pl.pallas_call(
        decoder_layer_kernel,
        out_shape=jax.ShapeDtypeStruct((B, T, E), hidden.dtype),
        grid=(B,),
        in_specs=in_specs,
        out_specs=_batched_spec((1, T, E)),
        compiler_params=pltpu.CompilerParams(
            dimension_semantics=("parallel",),          # megacore-shard over batch
            vmem_limit_bytes=64 * 1024 * 1024,
        ),
    )(hidden, enc_hidden, self_mask, cross_mask,
      w_self_qkv, b_self_qkv, wq2, w_cross_kv, b_cross_kv,
      w_out, wf1, bf1, wf2, vecs)
    return out


# ---------------- pure-JAX reference (same math, no Pallas) ----------------
def reference(hidden, enc_hidden, self_mask, cross_mask, params):
    (wq1, bq1, wk1, bk1, wv1, bv1, wo1, bo1, g1, be1,
     wq2, bq2, wk2, bk2, wv2, bv2, wo2, bo2, g2, be2,
     wf1, bf1, wf2, bf2, g3, be3) = params

    def mha(xq, xkv, mask, wq, bq, wk, bk, wv, bv, wo, bo):
        B, T, E = xq.shape
        S = xkv.shape[1]
        q = (xq @ wq + bq) * SCALING
        k = xkv @ wk + bk
        v = xkv @ wv + bv
        q = q.reshape(B, T, NUM_HEADS, HEAD_DIM).transpose(0, 2, 1, 3)
        k = k.reshape(B, S, NUM_HEADS, HEAD_DIM).transpose(0, 2, 1, 3)
        v = v.reshape(B, S, NUM_HEADS, HEAD_DIM).transpose(0, 2, 1, 3)
        s = jnp.einsum("bhtd,bhsd->bhts", q, k) + mask[:, None, :, :]
        p = jax.nn.softmax(s, axis=-1)
        o = jnp.einsum("bhts,bhsd->bhtd", p, v)
        o = o.transpose(0, 2, 1, 3).reshape(B, T, E)
        return o @ wo + bo

    def ln(x, g, b):
        mu = jnp.mean(x, axis=-1, keepdims=True)
        var = jnp.mean((x - mu) ** 2, axis=-1, keepdims=True)
        return (x - mu) * jax.lax.rsqrt(var + LN_EPS) * g + b

    h = hidden
    h = ln(h + mha(h, h, self_mask, wq1, bq1, wk1, bk1, wv1, bv1, wo1, bo1), g1, be1)
    h = ln(h + mha(h, enc_hidden, cross_mask, wq2, bq2, wk2, bk2, wv2, bv2, wo2, bo2), g2, be2)
    ff = (_gelu(h @ wf1 + bf1)) @ wf2 + bf2
    return ln(h + ff, g3, be3)


def init_params(key):
    """Deterministic parameter init. Linear weights stored transposed: (in, out)."""
    ks = jax.random.split(key, 32)
    i = 0

    def nxt():
        nonlocal i
        k = ks[i]
        i += 1
        return k

    def linear(in_dim, out_dim):
        w = jax.random.normal(nxt(), (in_dim, out_dim), jnp.float32) * 0.05
        b = jax.random.normal(nxt(), (1, out_dim), jnp.float32) * 0.01
        return w, b

    params = []
    # self attention q,k,v,out
    for _ in range(4):
        params += list(linear(EMBED_DIM, EMBED_DIM))
    # self_attn_layer_norm
    params += [jnp.ones((1, EMBED_DIM), jnp.float32), jnp.zeros((1, EMBED_DIM), jnp.float32)]
    # cross attention q,k,v,out
    for _ in range(4):
        params += list(linear(EMBED_DIM, EMBED_DIM))
    # encoder_attn_layer_norm
    params += [jnp.ones((1, EMBED_DIM), jnp.float32), jnp.zeros((1, EMBED_DIM), jnp.float32)]
    # fc1, fc2
    params += list(linear(EMBED_DIM, FFN_DIM))
    params += list(linear(FFN_DIM, EMBED_DIM))
    # final_layer_norm
    params += [jnp.ones((1, EMBED_DIM), jnp.float32), jnp.zeros((1, EMBED_DIM), jnp.float32)]
    return params


if __name__ == "__main__":
    key = jax.random.PRNGKey(0)
    k_h, k_e, k_p = jax.random.split(key, 3)

    hidden = jax.random.normal(k_h, (BATCH, TGT_LEN, EMBED_DIM), jnp.float32)
    enc_hidden = jax.random.normal(k_e, (BATCH, SRC_LEN, EMBED_DIM), jnp.float32)

    # causal self-attention mask (additive, large negative above diagonal)
    causal = jnp.triu(jnp.full((TGT_LEN, TGT_LEN), MASK_NEG, jnp.float32), k=1)
    self_mask = jnp.broadcast_to(causal, (BATCH, TGT_LEN, TGT_LEN))
    # cross-attention mask: no padding -> zeros
    cross_mask = jnp.zeros((BATCH, TGT_LEN, SRC_LEN), jnp.float32)

    params = init_params(k_p)

    out = bart_decoder_layer(hidden, enc_hidden, self_mask, cross_mask, params)
    out = jax.block_until_ready(out)

    ref = reference(hidden, enc_hidden, self_mask, cross_mask, params)
    np.testing.assert_allclose(np.asarray(out), np.asarray(ref), rtol=1e-4, atol=1e-4)

    print("KERNEL_OK")
</pallas_src>

<mosaic_0001>
module attributes {stable_mosaic.version = 11 : i64} {
  func.func @decoder_layer_kernel(%arg0: i32, %arg1: memref<1x8x32xf32, #tpu.memory_space<vmem>>, %arg2: memref<1x8x32xf32, #tpu.memory_space<vmem>>, %arg3: memref<1x8x8xf32, #tpu.memory_space<vmem>>, %arg4: memref<1x8x8xf32, #tpu.memory_space<vmem>>, %arg5: memref<32x96xf32, #tpu.memory_space<vmem>>, %arg6: memref<1x96xf32, #tpu.memory_space<vmem>>, %arg7: memref<32x32xf32, #tpu.memory_space<vmem>>, %arg8: memref<32x64xf32, #tpu.memory_space<vmem>>, %arg9: memref<1x64xf32, #tpu.memory_space<vmem>>, %arg10: memref<2x32x32xf32, #tpu.memory_space<vmem>>, %arg11: memref<32x64xf32, #tpu.memory_space<vmem>>, %arg12: memref<1x64xf32, #tpu.memory_space<vmem>>, %arg13: memref<64x32xf32, #tpu.memory_space<vmem>>, %arg14: memref<10x32xf32, #tpu.memory_space<vmem>>, %arg15: memref<1x8x32xf32, #tpu.memory_space<vmem>>) attributes {dimension_semantics = [#tpu.dimension_semantics<parallel>], iteration_bounds = array<i64: 2>, scalar_prefetch = 0 : i64, scratch_operands = 0 : i64, tpu.core_type = #tpu.core_type<tc>, window_params = [{transform_indices = @transform_0, window_bounds = array<i64: 1, 8, 32>}, {transform_indices = @transform_1, window_bounds = array<i64: 1, 8, 32>}, {transform_indices = @transform_2, window_bounds = array<i64: 1, 8, 8>}, {transform_indices = @transform_3, window_bounds = array<i64: 1, 8, 8>}, {pipeline_mode = #tpu.pipeline_mode<synchronous>, transform_indices = @transform_4, window_bounds = array<i64: 32, 96>}, {pipeline_mode = #tpu.pipeline_mode<synchronous>, transform_indices = @transform_5, window_bounds = array<i64: 1, 96>}, {pipeline_mode = #tpu.pipeline_mode<synchronous>, transform_indices = @transform_6, window_bounds = array<i64: 32, 32>}, {pipeline_mode = #tpu.pipeline_mode<synchronous>, transform_indices = @transform_7, window_bounds = array<i64: 32, 64>}, {pipeline_mode = #tpu.pipeline_mode<synchronous>, transform_indices = @transform_8, window_bounds = array<i64: 1, 64>}, {pipeline_mode = #tpu.pipeline_mode<synchronous>, transform_indices = @transform_9, window_bounds = array<i64: 2, 32, 32>}, {pipeline_mode = #tpu.pipeline_mode<synchronous>, transform_indices = @transform_10, window_bounds = array<i64: 32, 64>}, {pipeline_mode = #tpu.pipeline_mode<synchronous>, transform_indices = @transform_11, window_bounds = array<i64: 1, 64>}, {pipeline_mode = #tpu.pipeline_mode<synchronous>, transform_indices = @transform_12, window_bounds = array<i64: 64, 32>}, {pipeline_mode = #tpu.pipeline_mode<synchronous>, transform_indices = @transform_13, window_bounds = array<i64: 10, 32>}, {transform_indices = @transform_14, window_bounds = array<i64: 1, 8, 32>}]} {
    %c0 = arith.constant 0 : index
    %c0_0 = arith.constant 0 : index
    %c0_1 = arith.constant 0 : index
    %0 = vector.load %arg1[%c0, %c0_0, %c0_1] : memref<1x8x32xf32, #tpu.memory_space<vmem>>, vector<1x8x32xf32>
    %1 = vector.shape_cast %0 : vector<1x8x32xf32> to vector<8x32xf32>
    %c0_2 = arith.constant 0 : index
    %c0_3 = arith.constant 0 : index
    %c0_4 = arith.constant 0 : index
    %2 = vector.load %arg2[%c0_2, %c0_3, %c0_4] : memref<1x8x32xf32, #tpu.memory_space<vmem>>, vector<1x8x32xf32>
    %3 = vector.shape_cast %2 : vector<1x8x32xf32> to vector<8x32xf32>
    %c0_5 = arith.constant 0 : index
    %c0_6 = arith.constant 0 : index
    %c0_7 = arith.constant 0 : index
    %4 = vector.load %arg3[%c0_5, %c0_6, %c0_7] : memref<1x8x8xf32, #tpu.memory_space<vmem>>, vector<1x8x8xf32>
    %5 = vector.shape_cast %4 : vector<1x8x8xf32> to vector<8x8xf32>
    %c0_8 = arith.constant 0 : index
    %c0_9 = arith.constant 0 : index
    %c0_10 = arith.constant 0 : index
    %6 = vector.load %arg4[%c0_8, %c0_9, %c0_10] : memref<1x8x8xf32, #tpu.memory_space<vmem>>, vector<1x8x8xf32>
    %7 = vector.shape_cast %6 : vector<1x8x8xf32> to vector<8x8xf32>
    %c0_11 = arith.constant 0 : index
    %c0_12 = arith.constant 0 : index
    %8 = vector.load %arg14[%c0_11, %c0_12] : memref<10x32xf32, #tpu.memory_space<vmem>>, vector<10x32xf32>
    %9 = vector.extract_strided_slice %8 {offsets = [0, 0], sizes = [1, 32], strides = [1, 1]} : vector<10x32xf32> to vector<1x32xf32>
    %10 = vector.extract_strided_slice %8 {offsets = [1, 0], sizes = [1, 32], strides = [1, 1]} : vector<10x32xf32> to vector<1x32xf32>
    %11 = vector.extract_strided_slice %8 {offsets = [2, 0], sizes = [1, 32], strides = [1, 1]} : vector<10x32xf32> to vector<1x32xf32>
    %12 = vector.extract_strided_slice %8 {offsets = [3, 0], sizes = [1, 32], strides = [1, 1]} : vector<10x32xf32> to vector<1x32xf32>
    %13 = vector.extract_strided_slice %8 {offsets = [4, 0], sizes = [1, 32], strides = [1, 1]} : vector<10x32xf32> to vector<1x32xf32>
    %14 = vector.extract_strided_slice %8 {offsets = [5, 0], sizes = [1, 32], strides = [1, 1]} : vector<10x32xf32> to vector<1x32xf32>
    %15 = vector.extract_strided_slice %8 {offsets = [6, 0], sizes = [1, 32], strides = [1, 1]} : vector<10x32xf32> to vector<1x32xf32>
    %16 = vector.extract_strided_slice %8 {offsets = [7, 0], sizes = [1, 32], strides = [1, 1]} : vector<10x32xf32> to vector<1x32xf32>
    %17 = vector.extract_strided_slice %8 {offsets = [8, 0], sizes = [1, 32], strides = [1, 1]} : vector<10x32xf32> to vector<1x32xf32>
    %18 = vector.extract_strided_slice %8 {offsets = [9, 0], sizes = [1, 32], strides = [1, 1]} : vector<10x32xf32> to vector<1x32xf32>
    %c0_13 = arith.constant 0 : index
    %c0_14 = arith.constant 0 : index
    %19 = vector.load %arg5[%c0_13, %c0_14] : memref<32x96xf32, #tpu.memory_space<vmem>>, vector<32x96xf32>
    %cst = arith.constant dense<0.000000e+00> : vector<8x96xf32>
    %20 = tpu.matmul %1, %19, %cst {dimension_numbers = #tpu.dot_dimension_numbers<[1], [0], [0], [1], [0, 0, 1, 1], [], []>} : vector<8x32xf32>, vector<32x96xf32>, vector<8x96xf32> -> vector<8x96xf32>
    %c0_15 = arith.constant 0 : index
    %c0_16 = arith.constant 0 : index
    %21 = vector.load %arg6[%c0_15, %c0_16] : memref<1x96xf32, #tpu.memory_space<vmem>>, vector<1x96xf32>
    %22 = vector.broadcast %21 : vector<1x96xf32> to vector<8x96xf32>
    %23 = arith.addf %20, %22 : vector<8x96xf32>
    %24 = vector.extract_strided_slice %23 {offsets = [0, 0], sizes = [8, 32], strides = [1, 1]} : vector<8x96xf32> to vector<8x32xf32>
    %cst_17 = arith.constant 0.353553385 : f32
    %25 = vector.broadcast %cst_17 : f32 to vector<8x32xf32>
    %26 = arith.mulf %24, %25 : vector<8x32xf32>
    %27 = vector.extract_strided_slice %23 {offsets = [0, 32], sizes = [8, 32], strides = [1, 1]} : vector<8x96xf32> to vector<8x32xf32>
    %28 = vector.extract_strided_slice %23 {offsets = [0, 64], sizes = [8, 32], strides = [1, 1]} : vector<8x96xf32> to vector<8x32xf32>
    %29 = vector.extract_strided_slice %26 {offsets = [0, 0], sizes = [8, 8], strides = [1, 1]} : vector<8x32xf32> to vector<8x8xf32>
    %30 = vector.extract_strided_slice %26 {offsets = [0, 8], sizes = [8, 8], strides = [1, 1]} : vector<8x32xf32> to vector<8x8xf32>
    %31 = vector.extract_strided_slice %26 {offsets = [0, 16], sizes = [8, 8], strides = [1, 1]} : vector<8x32xf32> to vector<8x8xf32>
    %32 = vector.extract_strided_slice %26 {offsets = [0, 24], sizes = [8, 8], strides = [1, 1]} : vector<8x32xf32> to vector<8x8xf32>
    %33 = vector.shape_cast %29 : vector<8x8xf32> to vector<1x8x8xf32>
    %34 = vector.shape_cast %30 : vector<8x8xf32> to vector<1x8x8xf32>
    %35 = vector.shape_cast %31 : vector<8x8xf32> to vector<1x8x8xf32>
    %36 = vector.shape_cast %32 : vector<8x8xf32> to vector<1x8x8xf32>
    %37 = tpu.concatenate %33, %34, %35, %36 in 0 : vector<1x8x8xf32>, vector<1x8x8xf32>, vector<1x8x8xf32>, vector<1x8x8xf32> -> vector<4x8x8xf32>
    %38 = vector.extract_strided_slice %27 {offsets = [0, 0], sizes = [8, 8], strides = [1, 1]} : vector<8x32xf32> to vector<8x8xf32>
    %39 = vector.extract_strided_slice %27 {offsets = [0, 8], sizes = [8, 8], strides = [1, 1]} : vector<8x32xf32> to vector<8x8xf32>
    %40 = vector.extract_strided_slice %27 {offsets = [0, 16], sizes = [8, 8], strides = [1, 1]} : vector<8x32xf32> to vector<8x8xf32>
    %41 = vector.extract_strided_slice %27 {offsets = [0, 24], sizes = [8, 8], strides = [1, 1]} : vector<8x32xf32> to vector<8x8xf32>
    %42 = vector.shape_cast %38 : vector<8x8xf32> to vector<1x8x8xf32>
    %43 = vector.shape_cast %39 : vector<8x8xf32> to vector<1x8x8xf32>
    %44 = vector.shape_cast %40 : vector<8x8xf32> to vector<1x8x8xf32>
    %45 = vector.shape_cast %41 : vector<8x8xf32> to vector<1x8x8xf32>
    %46 = tpu.concatenate %42, %43, %44, %45 in 0 : vector<1x8x8xf32>, vector<1x8x8xf32>, vector<1x8x8xf32>, vector<1x8x8xf32> -> vector<4x8x8xf32>
    %47 = vector.extract_strided_slice %28 {offsets = [0, 0], sizes = [8, 8], strides = [1, 1]} : vector<8x32xf32> to vector<8x8xf32>
    %48 = vector.extract_strided_slice %28 {offsets = [0, 8], sizes = [8, 8], strides = [1, 1]} : vector<8x32xf32> to vector<8x8xf32>
    %49 = vector.extract_strided_slice %28 {offsets = [0, 16], sizes = [8, 8], strides = [1, 1]} : vector<8x32xf32> to vector<8x8xf32>
    %50 = vector.extract_strided_slice %28 {offsets = [0, 24], sizes = [8, 8], strides = [1, 1]} : vector<8x32xf32> to vector<8x8xf32>
    %51 = vector.shape_cast %47 : vector<8x8xf32> to vector<1x8x8xf32>
    %52 = vector.shape_cast %48 : vector<8x8xf32> to vector<1x8x8xf32>
    %53 = vector.shape_cast %49 : vector<8x8xf32> to vector<1x8x8xf32>
    %54 = vector.shape_cast %50 : vector<8x8xf32> to vector<1x8x8xf32>
    %55 = tpu.concatenate %51, %52, %53, %54 in 0 : vector<1x8x8xf32>, vector<1x8x8xf32>, vector<1x8x8xf32>, vector<1x8x8xf32> -> vector<4x8x8xf32>
    "tpu.trace_start"() <{level = 10 : i32, message = "hqd,hkd->hqk"}> : () -> ()
    %cst_18 = arith.constant dense<0.000000e+00> : vector<4x8x8xf32>
    %56 = tpu.matmul %37, %46, %cst_18 {dimension_numbers = #tpu.dot_dimension_numbers<[2], [2], [1], [1], [0, 0, 0, 1, 1, 1], [0], [0]>} : vector<4x8x8xf32>, vector<4x8x8xf32>, vector<4x8x8xf32> -> vector<4x8x8xf32>
    "tpu.trace_stop"() : () -> ()
    %57 = vector.shape_cast %5 : vector<8x8xf32> to vector<1x8x8xf32>
    %58 = vector.broadcast %57 : vector<1x8x8xf32> to vector<4x8x8xf32>
    %59 = arith.addf %56, %58 : vector<4x8x8xf32>
    %cst_19 = arith.constant dense<0xFF800000> : vector<4x8xf32>
    %60 = vector.multi_reduction <maximumf>, %59, %cst_19 [2] : vector<4x8x8xf32> to vector<4x8xf32>
    %61 = vector.shape_cast %60 : vector<4x8xf32> to vector<4x8x1xf32>
    %62 = vector.broadcast %61 : vector<4x8x1xf32> to vector<4x8x8xf32>
    %63 = arith.subf %59, %62 : vector<4x8x8xf32>
    %64 = math.exp %63 : vector<4x8x8xf32>
    %cst_20 = arith.constant dense<0.000000e+00> : vector<4x8xf32>
    %65 = vector.multi_reduction <add>, %64, %cst_20 [2] : vector<4x8x8xf32> to vector<4x8xf32>
    %66 = vector.shape_cast %65 : vector<4x8xf32> to vector<4x8x1xf32>
    %67 = vector.broadcast %66 : vector<4x8x1xf32> to vector<4x8x8xf32>
    %68 = arith.divf %64, %67 : vector<4x8x8xf32>
    "tpu.trace_start"() <{level = 10 : i32, message = "hqk,hkd->hqd"}> : () -> ()
    %cst_21 = arith.constant dense<0.000000e+00> : vector<4x8x8xf32>
    %69 = tpu.matmul %68, %55, %cst_21 {dimension_numbers = #tpu.dot_dimension_numbers<[2], [1], [1], [2], [0, 0, 0, 1, 1, 2], [0], [0]>} : vector<4x8x8xf32>, vector<4x8x8xf32>, vector<4x8x8xf32> -> vector<4x8x8xf32>
    "tpu.trace_stop"() : () -> ()
    %70 = vector.extract_strided_slice %69 {offsets = [0, 0, 0], sizes = [1, 8, 8], strides = [1, 1, 1]} : vector<4x8x8xf32> to vector<1x8x8xf32>
    %71 = vector.shape_cast %70 : vector<1x8x8xf32> to vector<8x8xf32>
    %72 = vector.extract_strided_slice %69 {offsets = [1, 0, 0], sizes = [1, 8, 8], strides = [1, 1, 1]} : vector<4x8x8xf32> to vector<1x8x8xf32>
    %73 = vector.shape_cast %72 : vector<1x8x8xf32> to vector<8x8xf32>
    %74 = vector.extract_strided_slice %69 {offsets = [2, 0, 0], sizes = [1, 8, 8], strides = [1, 1, 1]} : vector<4x8x8xf32> to vector<1x8x8xf32>
    %75 = vector.shape_cast %74 : vector<1x8x8xf32> to vector<8x8xf32>
    %76 = vector.extract_strided_slice %69 {offsets = [3, 0, 0], sizes = [1, 8, 8], strides = [1, 1, 1]} : vector<4x8x8xf32> to vector<1x8x8xf32>
    %77 = vector.shape_cast %76 : vector<1x8x8xf32> to vector<8x8xf32>
    %78 = tpu.concatenate %71, %73, %75, %77 in 1 : vector<8x8xf32>, vector<8x8xf32>, vector<8x8xf32>, vector<8x8xf32> -> vector<8x32xf32>
    %c0_22 = arith.constant 0 : index
    %c0_23 = arith.constant 0 : index
    %c0_24 = arith.constant 0 : index
    %79 = vector.load %arg10[%c0_22, %c0_23, %c0_24] : memref<2x32x32xf32, #tpu.memory_space<vmem>>, vector<1x32x32xf32>
    %80 = vector.shape_cast %79 : vector<1x32x32xf32> to vector<32x32xf32>
    %cst_25 = arith.constant dense<0.000000e+00> : vector<8x32xf32>
    %81 = tpu.matmul %78, %80, %cst_25 {dimension_numbers = #tpu.dot_dimension_numbers<[1], [0], [0], [1], [0, 0, 1, 1], [], []>} : vector<8x32xf32>, vector<32x32xf32>, vector<8x32xf32> -> vector<8x32xf32>
    %82 = vector.broadcast %10 : vector<1x32xf32> to vector<8x32xf32>
    %83 = arith.addf %81, %82 : vector<8x32xf32>
    %84 = arith.addf %1, %83 : vector<8x32xf32>
    %cst_26 = arith.constant dense<0.000000e+00> : vector<8xf32>
    %85 = vector.multi_reduction <add>, %84, %cst_26 [1] : vector<8x32xf32> to vector<8xf32>
    %86 = vector.shape_cast %85 : vector<8xf32> to vector<8x1xf32>
    %cst_27 = arith.constant 3.200000e+01 : f32
    %87 = vector.broadcast %cst_27 : f32 to vector<8x1xf32>
    %88 = arith.divf %86, %87 : vector<8x1xf32>
    %89 = vector.broadcast %88 : vector<8x1xf32> to vector<8x32xf32>
    %90 = arith.subf %84, %89 : vector<8x32xf32>
    %91 = arith.mulf %90, %90 : vector<8x32xf32>
    %cst_28 = arith.constant dense<0.000000e+00> : vector<8xf32>
    %92 = vector.multi_reduction <add>, %91, %cst_28 [1] : vector<8x32xf32> to vector<8xf32>
    %93 = vector.shape_cast %92 : vector<8xf32> to vector<8x1xf32>
    %cst_29 = arith.constant 3.200000e+01 : f32
    %94 = vector.broadcast %cst_29 : f32 to vector<8x1xf32>
    %95 = arith.divf %93, %94 : vector<8x1xf32>
    %96 = vector.broadcast %88 : vector<8x1xf32> to vector<8x32xf32>
    %97 = arith.subf %84, %96 : vector<8x32xf32>
    %cst_30 = arith.constant 9.99999974E-6 : f32
    %98 = vector.broadcast %cst_30 : f32 to vector<8x1xf32>
    %99 = arith.addf %95, %98 : vector<8x1xf32>
    %100 = math.rsqrt %99 : vector<8x1xf32>
    %101 = vector.broadcast %100 : vector<8x1xf32> to vector<8x32xf32>
    %102 = arith.mulf %97, %101 : vector<8x32xf32>
    %103 = vector.broadcast %13 : vector<1x32xf32> to vector<8x32xf32>
    %104 = arith.mulf %102, %103 : vector<8x32xf32>
    %105 = vector.broadcast %14 : vector<1x32xf32> to vector<8x32xf32>
    %106 = arith.addf %104, %105 : vector<8x32xf32>
    %c0_31 = arith.constant 0 : index
    %c0_32 = arith.constant 0 : index
    %107 = vector.load %arg7[%c0_31, %c0_32] : memref<32x32xf32, #tpu.memory_space<vmem>>, vector<32x32xf32>
    %cst_33 = arith.constant dense<0.000000e+00> : vector<8x32xf32>
    %108 = tpu.matmul %106, %107, %cst_33 {dimension_numbers = #tpu.dot_dimension_numbers<[1], [0], [0], [1], [0, 0, 1, 1], [], []>} : vector<8x32xf32>, vector<32x32xf32>, vector<8x32xf32> -> vector<8x32xf32>
    %109 = vector.broadcast %9 : vector<1x32xf32> to vector<8x32xf32>
    %110 = arith.addf %108, %109 : vector<8x32xf32>
    %cst_34 = arith.constant 0.353553385 : f32
    %111 = vector.broadcast %cst_34 : f32 to vector<8x32xf32>
    %112 = arith.mulf %110, %111 : vector<8x32xf32>
    %c0_35 = arith.constant 0 : index
    %c0_36 = arith.constant 0 : index
    %113 = vector.load %arg8[%c0_35, %c0_36] : memref<32x64xf32, #tpu.memory_space<vmem>>, vector<32x64xf32>
    %cst_37 = arith.constant dense<0.000000e+00> : vector<8x64xf32>
    %114 = tpu.matmul %3, %113, %cst_37 {dimension_numbers = #tpu.dot_dimension_numbers<[1], [0], [0], [1], [0, 0, 1, 1], [], []>} : vector<8x32xf32>, vector<32x64xf32>, vector<8x64xf32> -> vector<8x64xf32>
    %c0_38 = arith.constant 0 : index
    %c0_39 = arith.constant 0 : index
    %115 = vector.load %arg9[%c0_38, %c0_39] : memref<1x64xf32, #tpu.memory_space<vmem>>, vector<1x64xf32>
    %116 = vector.broadcast %115 : vector<1x64xf32> to vector<8x64xf32>
    %117 = arith.addf %114, %116 : vector<8x64xf32>
    %118 = vector.extract_strided_slice %117 {offsets = [0, 0], sizes = [8, 32], strides = [1, 1]} : vector<8x64xf32> to vector<8x32xf32>
    %119 = vector.extract_strided_slice %117 {offsets = [0, 32], sizes = [8, 32], strides = [1, 1]} : vector<8x64xf32> to vector<8x32xf32>
    %120 = vector.extract_strided_slice %112 {offsets = [0, 0], sizes = [8, 8], strides = [1, 1]} : vector<8x32xf32> to vector<8x8xf32>
    %121 = vector.extract_strided_slice %112 {offsets = [0, 8], sizes = [8, 8], strides = [1, 1]} : vector<8x32xf32> to vector<8x8xf32>
    %122 = vector.extract_strided_slice %112 {offsets = [0, 16], sizes = [8, 8], strides = [1, 1]} : vector<8x32xf32> to vector<8x8xf32>
    %123 = vector.extract_strided_slice %112 {offsets = [0, 24], sizes = [8, 8], strides = [1, 1]} : vector<8x32xf32> to vector<8x8xf32>
    %124 = vector.shape_cast %120 : vector<8x8xf32> to vector<1x8x8xf32>
    %125 = vector.shape_cast %121 : vector<8x8xf32> to vector<1x8x8xf32>
    %126 = vector.shape_cast %122 : vector<8x8xf32> to vector<1x8x8xf32>
    %127 = vector.shape_cast %123 : vector<8x8xf32> to vector<1x8x8xf32>
    %128 = tpu.concatenate %124, %125, %126, %127 in 0 : vector<1x8x8xf32>, vector<1x8x8xf32>, vector<1x8x8xf32>, vector<1x8x8xf32> -> vector<4x8x8xf32>
    %129 = vector.extract_strided_slice %118 {offsets = [0, 0], sizes = [8, 8], strides = [1, 1]} : vector<8x32xf32> to vector<8x8xf32>
    %130 = vector.extract_strided_slice %118 {offsets = [0, 8], sizes = [8, 8], strides = [1, 1]} : vector<8x32xf32> to vector<8x8xf32>
    %131 = vector.extract_strided_slice %118 {offsets = [0, 16], sizes = [8, 8], strides = [1, 1]} : vector<8x32xf32> to vector<8x8xf32>
    %132 = vector.extract_strided_slice %118 {offsets = [0, 24], sizes = [8, 8], strides = [1, 1]} : vector<8x32xf32> to vector<8x8xf32>
    %133 = vector.shape_cast %129 : vector<8x8xf32> to vector<1x8x8xf32>
    %134 = vector.shape_cast %130 : vector<8x8xf32> to vector<1x8x8xf32>
    %135 = vector.shape_cast %131 : vector<8x8xf32> to vector<1x8x8xf32>
    %136 = vector.shape_cast %132 : vector<8x8xf32> to vector<1x8x8xf32>
    %137 = tpu.concatenate %133, %134, %135, %136 in 0 : vector<1x8x8xf32>, vector<1x8x8xf32>, vector<1x8x8xf32>, vector<1x8x8xf32> -> vector<4x8x8xf32>
    %138 = vector.extract_strided_slice %119 {offsets = [0, 0], sizes = [8, 8], strides = [1, 1]} : vector<8x32xf32> to vector<8x8xf32>
    %139 = vector.extract_strided_slice %119 {offsets = [0, 8], sizes = [8, 8], strides = [1, 1]} : vector<8x32xf32> to vector<8x8xf32>
    %140 = vector.extract_strided_slice %119 {offsets = [0, 16], sizes = [8, 8], strides = [1, 1]} : vector<8x32xf32> to vector<8x8xf32>
    %141 = vector.extract_strided_slice %119 {offsets = [0, 24], sizes = [8, 8], strides = [1, 1]} : vector<8x32xf32> to vector<8x8xf32>
    %142 = vector.shape_cast %138 : vector<8x8xf32> to vector<1x8x8xf32>
    %143 = vector.shape_cast %139 : vector<8x8xf32> to vector<1x8x8xf32>
    %144 = vector.shape_cast %140 : vector<8x8xf32> to vector<1x8x8xf32>
    %145 = vector.shape_cast %141 : vector<8x8xf32> to vector<1x8x8xf32>
    %146 = tpu.concatenate %142, %143, %144, %145 in 0 : vector<1x8x8xf32>, vector<1x8x8xf32>, vector<1x8x8xf32>, vector<1x8x8xf32> -> vector<4x8x8xf32>
    "tpu.trace_start"() <{level = 10 : i32, message = "hqd,hkd->hqk"}> : () -> ()
    %cst_40 = arith.constant dense<0.000000e+00> : vector<4x8x8xf32>
    %147 = tpu.matmul %128, %137, %cst_40 {dimension_numbers = #tpu.dot_dimension_numbers<[2], [2], [1], [1], [0, 0, 0, 1, 1, 1], [0], [0]>} : vector<4x8x8xf32>, vector<4x8x8xf32>, vector<4x8x8xf32> -> vector<4x8x8xf32>
    "tpu.trace_stop"() : () -> ()
    %148 = vector.shape_cast %7 : vector<8x8xf32> to vector<1x8x8xf32>
    %149 = vector.broadcast %148 : vector<1x8x8xf32> to vector<4x8x8xf32>
    %150 = arith.addf %147, %149 : vector<4x8x8xf32>
    %cst_41 = arith.constant dense<0xFF800000> : vector<4x8xf32>
    %151 = vector.multi_reduction <maximumf>, %150, %cst_41 [2] : vector<4x8x8xf32> to vector<4x8xf32>
    %152 = vector.shape_cast %151 : vector<4x8xf32> to vector<4x8x1xf32>
    %153 = vector.broadcast %152 : vector<4x8x1xf32> to vector<4x8x8xf32>
    %154 = arith.subf %150, %153 : vector<4x8x8xf32>
    %155 = math.exp %154 : vector<4x8x8xf32>
    %cst_42 = arith.constant dense<0.000000e+00> : vector<4x8xf32>
    %156 = vector.multi_reduction <add>, %155, %cst_42 [2] : vector<4x8x8xf32> to vector<4x8xf32>
    %157 = vector.shape_cast %156 : vector<4x8xf32> to vector<4x8x1xf32>
    %158 = vector.broadcast %157 : vector<4x8x1xf32> to vector<4x8x8xf32>
    %159 = arith.divf %155, %158 : vector<4x8x8xf32>
    "tpu.trace_start"() <{level = 10 : i32, message = "hqk,hkd->hqd"}> : () -> ()
    %cst_43 = arith.constant dense<0.000000e+00> : vector<4x8x8xf32>
    %160 = tpu.matmul %159, %146, %cst_43 {dimension_numbers = #tpu.dot_dimension_numbers<[2], [1], [1], [2], [0, 0, 0, 1, 1, 2], [0], [0]>} : vector<4x8x8xf32>, vector<4x8x8xf32>, vector<4x8x8xf32> -> vector<4x8x8xf32>
    "tpu.trace_stop"() : () -> ()
    %161 = vector.extract_strided_slice %160 {offsets = [0, 0, 0], sizes = [1, 8, 8], strides = [1, 1, 1]} : vector<4x8x8xf32> to vector<1x8x8xf32>
    %162 = vector.shape_cast %161 : vector<1x8x8xf32> to vector<8x8xf32>
    %163 = vector.extract_strided_slice %160 {offsets = [1, 0, 0], sizes = [1, 8, 8], strides = [1, 1, 1]} : vector<4x8x8xf32> to vector<1x8x8xf32>
    %164 = vector.shape_cast %163 : vector<1x8x8xf32> to vector<8x8xf32>
    %165 = vector.extract_strided_slice %160 {offsets = [2, 0, 0], sizes = [1, 8, 8], strides = [1, 1, 1]} : vector<4x8x8xf32> to vector<1x8x8xf32>
    %166 = vector.shape_cast %165 : vector<1x8x8xf32> to vector<8x8xf32>
    %167 = vector.extract_strided_slice %160 {offsets = [3, 0, 0], sizes = [1, 8, 8], strides = [1, 1, 1]} : vector<4x8x8xf32> to vector<1x8x8xf32>
    %168 = vector.shape_cast %167 : vector<1x8x8xf32> to vector<8x8xf32>
    %169 = tpu.concatenate %162, %164, %166, %168 in 1 : vector<8x8xf32>, vector<8x8xf32>, vector<8x8xf32>, vector<8x8xf32> -> vector<8x32xf32>
    %c1 = arith.constant 1 : index
    %c0_44 = arith.constant 0 : index
    %c0_45 = arith.constant 0 : index
    %170 = vector.load %arg10[%c1, %c0_44, %c0_45] : memref<2x32x32xf32, #tpu.memory_space<vmem>>, vector<1x32x32xf32>
    %171 = vector.shape_cast %170 : vector<1x32x32xf32> to vector<32x32xf32>
    %cst_46 = arith.constant dense<0.000000e+00> : vector<8x32xf32>
    %172 = tpu.matmul %169, %171, %cst_46 {dimension_numbers = #tpu.dot_dimension_numbers<[1], [0], [0], [1], [0, 0, 1, 1], [], []>} : vector<8x32xf32>, vector<32x32xf32>, vector<8x32xf32> -> vector<8x32xf32>
    %173 = vector.broadcast %11 : vector<1x32xf32> to vector<8x32xf32>
    %174 = arith.addf %172, %173 : vector<8x32xf32>
    %175 = arith.addf %106, %174 : vector<8x32xf32>
    %cst_47 = arith.constant dense<0.000000e+00> : vector<8xf32>
    %176 = vector.multi_reduction <add>, %175, %cst_47 [1] : vector<8x32xf32> to vector<8xf32>
    %177 = vector.shape_cast %176 : vector<8xf32> to vector<8x1xf32>
    %cst_48 = arith.constant 3.200000e+01 : f32
    %178 = vector.broadcast %cst_48 : f32 to vector<8x1xf32>
    %179 = arith.divf %177, %178 : vector<8x1xf32>
    %180 = vector.broadcast %179 : vector<8x1xf32> to vector<8x32xf32>
    %181 = arith.subf %175, %180 : vector<8x32xf32>
    %182 = arith.mulf %181, %181 : vector<8x32xf32>
    %cst_49 = arith.constant dense<0.000000e+00> : vector<8xf32>
    %183 = vector.multi_reduction <add>, %182, %cst_49 [1] : vector<8x32xf32> to vector<8xf32>
    %184 = vector.shape_cast %183 : vector<8xf32> to vector<8x1xf32>
    %cst_50 = arith.constant 3.200000e+01 : f32
    %185 = vector.broadcast %cst_50 : f32 to vector<8x1xf32>
    %186 = arith.divf %184, %185 : vector<8x1xf32>
    %187 = vector.broadcast %179 : vector<8x1xf32> to vector<8x32xf32>
    %188 = arith.subf %175, %187 : vector<8x32xf32>
    %cst_51 = arith.constant 9.99999974E-6 : f32
    %189 = vector.broadcast %cst_51 : f32 to vector<8x1xf32>
    %190 = arith.addf %186, %189 : vector<8x1xf32>
    %191 = math.rsqrt %190 : vector<8x1xf32>
    %192 = vector.broadcast %191 : vector<8x1xf32> to vector<8x32xf32>
    %193 = arith.mulf %188, %192 : vector<8x32xf32>
    %194 = vector.broadcast %15 : vector<1x32xf32> to vector<8x32xf32>
    %195 = arith.mulf %193, %194 : vector<8x32xf32>
    %196 = vector.broadcast %16 : vector<1x32xf32> to vector<8x32xf32>
    %197 = arith.addf %195, %196 : vector<8x32xf32>
    %c0_52 = arith.constant 0 : index
    %c0_53 = arith.constant 0 : index
    %198 = vector.load %arg11[%c0_52, %c0_53] : memref<32x64xf32, #tpu.memory_space<vmem>>, vector<32x64xf32>
    %cst_54 = arith.constant dense<0.000000e+00> : vector<8x64xf32>
    %199 = tpu.matmul %197, %198, %cst_54 {dimension_numbers = #tpu.dot_dimension_numbers<[1], [0], [0], [1], [0, 0, 1, 1], [], []>} : vector<8x32xf32>, vector<32x64xf32>, vector<8x64xf32> -> vector<8x64xf32>
    %c0_55 = arith.constant 0 : index
    %c0_56 = arith.constant 0 : index
    %200 = vector.load %arg12[%c0_55, %c0_56] : memref<1x64xf32, #tpu.memory_space<vmem>>, vector<1x64xf32>
    %201 = vector.broadcast %200 : vector<1x64xf32> to vector<8x64xf32>
    %202 = arith.addf %199, %201 : vector<8x64xf32>
    %cst_57 = arith.constant 5.000000e-01 : f32
    %203 = vector.broadcast %cst_57 : f32 to vector<8x64xf32>
    %204 = arith.mulf %203, %202 : vector<8x64xf32>
    %cst_58 = arith.constant 0.707106769 : f32
    %205 = vector.broadcast %cst_58 : f32 to vector<8x64xf32>
    %206 = arith.mulf %202, %205 : vector<8x64xf32>
    %207 = math.erf %206 : vector<8x64xf32>
    %cst_59 = arith.constant 1.000000e+00 : f32
    %208 = vector.broadcast %cst_59 : f32 to vector<8x64xf32>
    %209 = arith.addf %208, %207 : vector<8x64xf32>
    %210 = arith.mulf %204, %209 : vector<8x64xf32>
    %c0_60 = arith.constant 0 : index
    %c0_61 = arith.constant 0 : index
    %211 = vector.load %arg13[%c0_60, %c0_61] : memref<64x32xf32, #tpu.memory_space<vmem>>, vector<64x32xf32>
    %cst_62 = arith.constant dense<0.000000e+00> : vector<8x32xf32>
    %212 = tpu.matmul %210, %211, %cst_62 {dimension_numbers = #tpu.dot_dimension_numbers<[1], [0], [0], [1], [0, 0, 1, 1], [], []>} : vector<8x64xf32>, vector<64x32xf32>, vector<8x32xf32> -> vector<8x32xf32>
    %213 = vector.broadcast %12 : vector<1x32xf32> to vector<8x32xf32>
    %214 = arith.addf %212, %213 : vector<8x32xf32>
    %215 = arith.addf %197, %214 : vector<8x32xf32>
    %cst_63 = arith.constant dense<0.000000e+00> : vector<8xf32>
    %216 = vector.multi_reduction <add>, %215, %cst_63 [1] : vector<8x32xf32> to vector<8xf32>
    %217 = vector.shape_cast %216 : vector<8xf32> to vector<8x1xf32>
    %cst_64 = arith.constant 3.200000e+01 : f32
    %218 = vector.broadcast %cst_64 : f32 to vector<8x1xf32>
    %219 = arith.divf %217, %218 : vector<8x1xf32>
    %220 = vector.broadcast %219 : vector<8x1xf32> to vector<8x32xf32>
    %221 = arith.subf %215, %220 : vector<8x32xf32>
    %222 = arith.mulf %221, %221 : vector<8x32xf32>
    %cst_65 = arith.constant dense<0.000000e+00> : vector<8xf32>
    %223 = vector.multi_reduction <add>, %222, %cst_65 [1] : vector<8x32xf32> to vector<8xf32>
    %224 = vector.shape_cast %223 : vector<8xf32> to vector<8x1xf32>
    %cst_66 = arith.constant 3.200000e+01 : f32
    %225 = vector.broadcast %cst_66 : f32 to vector<8x1xf32>
    %226 = arith.divf %224, %225 : vector<8x1xf32>
    %227 = vector.broadcast %219 : vector<8x1xf32> to vector<8x32xf32>
    %228 = arith.subf %215, %227 : vector<8x32xf32>
    %cst_67 = arith.constant 9.99999974E-6 : f32
    %229 = vector.broadcast %cst_67 : f32 to vector<8x1xf32>
    %230 = arith.addf %226, %229 : vector<8x1xf32>
    %231 = math.rsqrt %230 : vector<8x1xf32>
    %232 = vector.broadcast %231 : vector<8x1xf32> to vector<8x32xf32>
    %233 = arith.mulf %228, %232 : vector<8x32xf32>
    %234 = vector.broadcast %17 : vector<1x32xf32> to vector<8x32xf32>
    %235 = arith.mulf %233, %234 : vector<8x32xf32>
    %236 = vector.broadcast %18 : vector<1x32xf32> to vector<8x32xf32>
    %237 = arith.addf %235, %236 : vector<8x32xf32>
    %c0_68 = arith.constant 0 : index
    %c0_69 = arith.constant 0 : index
    %c0_70 = arith.constant 0 : index
    %238 = vector.load %arg15[%c0_68, %c0_69, %c0_70] : memref<1x8x32xf32, #tpu.memory_space<vmem>>, vector<1x8x32xf32>
    %239 = vector.shape_cast %238 : vector<1x8x32xf32> to vector<8x32xf32>
    %240 = vector.shape_cast %237 : vector<8x32xf32> to vector<1x8x32xf32>
    tpu.vector_store %arg15[%c0_68, %c0_69, %c0_70], %240 {strides = array<i32>} : memref<1x8x32xf32, #tpu.memory_space<vmem>>, vector<1x8x32xf32>,
    return
  }
  func.func @transform_0(%arg0: i32) -> (i32, i32, i32) {
    %c0_i32 = arith.constant 0 : i32
    %c0_i32_0 = arith.constant 0 : i32
    %c0_i32_1 = arith.constant 0 : i32
    return %arg0, %c0_i32, %c0_i32_0 : i32, i32, i32
  }
  func.func @transform_1(%arg0: i32) -> (i32, i32, i32) {
    %c0_i32 = arith.constant 0 : i32
    %c0_i32_0 = arith.constant 0 : i32
    %c0_i32_1 = arith.constant 0 : i32
    return %arg0, %c0_i32, %c0_i32_0 : i32, i32, i32
  }
  func.func @transform_2(%arg0: i32) -> (i32, i32, i32) {
    %c0_i32 = arith.constant 0 : i32
    %c0_i32_0 = arith.constant 0 : i32
    %c0_i32_1 = arith.constant 0 : i32
    return %arg0, %c0_i32, %c0_i32_0 : i32, i32, i32
  }
  func.func @transform_3(%arg0: i32) -> (i32, i32, i32) {
    %c0_i32 = arith.constant 0 : i32
    %c0_i32_0 = arith.constant 0 : i32
    %c0_i32_1 = arith.constant 0 : i32
    return %arg0, %c0_i32, %c0_i32_0 : i32, i32, i32
  }
  func.func @transform_4(%arg0: i32) -> (i32, i32) {
    %c0_i32 = arith.constant 0 : i32
    %c0_i32_0 = arith.constant 0 : i32
    %c0_i32_1 = arith.constant 0 : i32
    return %c0_i32, %c0_i32_0 : i32, i32
  }
  func.func @transform_5(%arg0: i32) -> (i32, i32) {
    %c0_i32 = arith.constant 0 : i32
    %c0_i32_0 = arith.constant 0 : i32
    %c0_i32_1 = arith.constant 0 : i32
    return %c0_i32, %c0_i32_0 : i32, i32
  }
  func.func @transform_6(%arg0: i32) -> (i32, i32) {
    %c0_i32 = arith.constant 0 : i32
    %c0_i32_0 = arith.constant 0 : i32
    %c0_i32_1 = arith.constant 0 : i32
    return %c0_i32, %c0_i32_0 : i32, i32
  }
  func.func @transform_7(%arg0: i32) -> (i32, i32) {
    %c0_i32 = arith.constant 0 : i32
    %c0_i32_0 = arith.constant 0 : i32
    %c0_i32_1 = arith.constant 0 : i32
    return %c0_i32, %c0_i32_0 : i32, i32
  }
  func.func @transform_8(%arg0: i32) -> (i32, i32) {
    %c0_i32 = arith.constant 0 : i32
    %c0_i32_0 = arith.constant 0 : i32
    %c0_i32_1 = arith.constant 0 : i32
    return %c0_i32, %c0_i32_0 : i32, i32
  }
  func.func @transform_9(%arg0: i32) -> (i32, i32, i32) {
    %c0_i32 = arith.constant 0 : i32
    %c0_i32_0 = arith.constant 0 : i32
    %c0_i32_1 = arith.constant 0 : i32
    %c0_i32_2 = arith.constant 0 : i32
    return %c0_i32, %c0_i32_0, %c0_i32_1 : i32, i32, i32
  }
  func.func @transform_10(%arg0: i32) -> (i32, i32) {
    %c0_i32 = arith.constant 0 : i32
    %c0_i32_0 = arith.constant 0 : i32
    %c0_i32_1 = arith.constant 0 : i32
    return %c0_i32, %c0_i32_0 : i32, i32
  }
  func.func @transform_11(%arg0: i32) -> (i32, i32) {
    %c0_i32 = arith.constant 0 : i32
    %c0_i32_0 = arith.constant 0 : i32
    %c0_i32_1 = arith.constant 0 : i32
    return %c0_i32, %c0_i32_0 : i32, i32
  }
  func.func @transform_12(%arg0: i32) -> (i32, i32) {
    %c0_i32 = arith.constant 0 : i32
    %c0_i32_0 = arith.constant 0 : i32
    %c0_i32_1 = arith.constant 0 : i32
    return %c0_i32, %c0_i32_0 : i32, i32
  }
  func.func @transform_13(%arg0: i32) -> (i32, i32) {
    %c0_i32 = arith.constant 0 : i32
    %c0_i32_0 = arith.constant 0 : i32
    %c0_i32_1 = arith.constant 0 : i32
    return %c0_i32, %c0_i32_0 : i32, i32
  }
  func.func @transform_14(%arg0: i32) -> (i32, i32, i32) {
    %c0_i32 = arith.constant 0 : i32
    %c0_i32_0 = arith.constant 0 : i32
    %c0_i32_1 = arith.constant 0 : i32
    return %arg0, %c0_i32, %c0_i32_0 : i32, i32, i32
  }
}

</mosaic_0001>

<bundles_post_ra>
// kernel: tpu_custom_call.1
= control target key start
LH: loop header
LB: loop body
LE: loop exit
PB: predicated region body
PF: predicated region fallthrough
CT: control target
= control target key end

     0   :  { %s4968_s0 = inlined_call_operand.hbm [shape: f32[2,8,32], index: 0, kind: input, shape index: {}]   ;;  %s4969_s1 = inlined_call_operand.hbm [shape: f32[2,8,32], index: 1, kind: input, shape index: {}]   ;;  %s4970_s2 = inlined_call_operand.hbm [shape: f32[2,8,8], index: 2, kind: input, shape index: {}]   ;;  %s4971_s3 = inlined_call_operand.hbm [shape: f32[2,8,8], index: 3, kind: input, shape index: {}]   ;;  %s4972_s4 = inlined_call_operand.hbm [shape: f32[32,96], index: 4, kind: input, shape index: {}]   ;;  %s4973_s5 = inlined_call_operand.hbm [shape: f32[1,96], index: 5, kind: input, shape index: {}]   ;;  %s4974_s6 = inlined_call_operand.hbm [shape: f32[32,32], index: 6, kind: input, shape index: {}]   ;;  %s4975_s7 = inlined_call_operand.hbm [shape: f32[32,64], index: 7, kind: input, shape index: {}]   ;;  %s4976_s8 = inlined_call_operand.hbm [shape: f32[1,64], index: 8, kind: input, shape index: {}]   ;;  %s4977_s9 = inlined_call_operand.hbm [shape: f32[2,32,32], index: 9, kind: input, shape index: {}]   ;;  %s4978_s10 = inlined_call_operand.hbm [shape: f32[32,64], index: 10, kind: input, shape index: {}]   ;;  %s4979_s11 = inlined_call_operand.hbm [shape: f32[1,64], index: 11, kind: input, shape index: {}]   ;;  %s4980_s12 = inlined_call_operand.hbm [shape: f32[64,32], index: 12, kind: input, shape index: {}]   ;;  %s4981_s13 = inlined_call_operand.hbm [shape: f32[10,32], index: 13, kind: input, shape index: {}]   ;;  %s4982_s14 = inlined_call_operand.hbm [shape: f32[2,8,32], index: 14, kind: output, shape index: {}]  }
   0x1   :  { %5011 = sst [smem:[#allocation41_spill]] %s4968_s0 }
   0x2   :  { %5012 = sst [smem:[#allocation42_spill]] %s4969_s1 }
   0x3   :  { %5013 = sst [smem:[#allocation43_spill]] %s4970_s2 }
   0x4   :  { %5014 = sst [smem:[#allocation44_spill]] %s4971_s3 }
   0x5   :  { %5015 = sst [smem:[#allocation45_spill]] %s4972_s4 }
   0x6   :  { %5016 = sst [smem:[#allocation46_spill]] %s4973_s5 }
   0x7   :  { %5017 = sst [smem:[#allocation47_spill]] %s4974_s6 }
   0x8   :  { %5018 = sst [smem:[#allocation48_spill]] %s4975_s7 }
   0x9   :  { %5019 = sst [smem:[#allocation49_spill]] %s4976_s8 }
   0xa   :  { %5020 = sst [smem:[#allocation50_spill]] %s4977_s9 }
   0xb   :  { %5021 = sst [smem:[#allocation51_spill]] %s4978_s10 }
   0xc   :  { %5022 = sst [smem:[#allocation52_spill]] %s4979_s11 }
   0xd   :  { %5023 = sst [smem:[#allocation53_spill]] %s4981_s13 }
   0xe   :  { %5024 = sst [smem:[#allocation54_spill]] %s4982_s14 }
   0xf   :  { %19 = vsyncpa [#allocation3], 0 }
  0x10   :  { %21 = vsyncpa [#allocation3 + $0x1], 0 }
  0x11   :  { %22 = vsyncpa [#allocation6], 0 }
  0x12   :  { %24 = vsyncpa [#allocation6 + $0x1], 0 }
  0x13   :  { %25 = vsyncpa [#allocation9], 0 }
  0x14   :  { %27 = vsyncpa [#allocation9 + $0x1], 0 }
  0x15   :  { %28 = vsyncpa [#allocation12], 0 }
  0x16   :  { %29 = vsyncpa [#allocation15], 0 }
  0x17   :  { %30 = vsyncpa [#allocation18], 0 }
  0x18   :  { %31 = vsyncpa [#allocation21], 0 }
  0x19   :  { %32 = vsyncpa [#allocation24], 0 }
  0x1a   :  { %33 = vsyncpa [#allocation4], 0 }
  0x1b   :  { %35 = vsyncpa [#allocation4 + $0x1], 0  ;;  %s4179_s29 = smov 0   ;;  %s4181_s30 = smov 0  }
  0x1c   :  { %s4183_s15 = smov 0   ;;  %s4185_s16 = smov 0  }
  0x1d LB: > { %5025 = sst [smem:[#allocation36_spill]] %s4062_s29  ;;  %s4076_s17 = smov [#allocation10]   ;;  %s4074_s16 = sphi %s4185_s16, %s5083_s16   ;;  %s4070_s15 = sphi %s4183_s15, %s5087_s15   ;;  %s4066_s30 = sphi %s4181_s30, %s5086_s30   ;;  %s4062_s29 = sphi %s4179_s29, %s5085_s29  }
  0x1e   : > { %s398_s18 = sshll.u32 %s4076_s17, 4  ;;  %s4200_s19 = sadd.s32 4294967295, %s4074_s16   ;;  %s4205_s18 = int_to_ptr.vmem [resolvable:$true] %s398_s18 }
  0x1f   : > { %p3003_p0 = scmp.ge.s32.totalorder %s4074_s16, 1  ;;  %p4989_p1 = scmp.eq.s32.totalorder %s4200_s19, 0 }
  0x20   : > { %p386_p2 = scmp.lt.s32.totalorder %s4074_s16, 3  ;;  %s4077_s21 = smov [#allocation11]  }
  0x21   : > { %s412_s22 = sshll.u32 %s4077_s21, 4  ;;  %s4078_s24 = smov [#allocation14]   ;;  %s4220_s22 = int_to_ptr.vmem [resolvable:$true] %s412_s22 }
  0x22   : > { %p4207_p3 = pnand %p3003_p0, %p386_p2  ;;  %s435_s25 = sshll.u32 %s4078_s24, 4  ;;  %s4222_s25 = int_to_ptr.vmem [resolvable:$true] %s435_s25 }
  0x23   : > { %s5029_s4 = sld [smem:[#allocation45_spill]] }
  0x24   : > { %s5026_s20 = scalar_select %p4207_p3, 1, 0 }
  0x25   : > { %p3411_p5 = pneg %p4207_p3 }
  0x26   : > { %5027 = sst [smem:[#allocation37_spill]] %s5026_s20 }
  0x27   : > { %p4216_p6 = pnand %p3411_p5, %p4989_p1 }
  0x29   : > { %s5028_s23 = scalar_select %p4216_p6, 1, 0 }
  0x2a   : > { %s3576_s28 = scalar_lea.hbm %s5029_s4, 512  ;;  %p4232_p8 = pneg %p4216_p6 }
  0x2b   : > { %p3577_p7 = scmp.ne.s32.totalorder %s5029_s4, %s3576_s28  ;;  %p3583_p11 = scmp.lt.u32.totalorder %s3576_s28, %s5029_s4 }
  0x2c   : > { %s5030_s21 = scalar_select %p4232_p8, 1, 0 }
  0x2d   : > { %p3579_p9 = pnand %p4232_p8, %p3577_p7 }
  0x2f   : > { %p3580_p10 = pneg %p3579_p9 }
  0x31   : > { %p3585_p12 = pnand %p3583_p11, %p3580_p10 }
  0x33   : > { %3588 = shalt.err (!%p3585_p12)
}
  0x34   : > { %s3589_s14 = scalar_lea.vmem %s4205_s18, 512  ;;  %p3597_p5 = scmp.lt.s32.totalorder %s4205_s18, %s4205_s18 }
  0x35   : > { %p3590_p13 = scmp.ne.s32.totalorder %s4205_s18, %s3589_s14  ;;  %p3598_p4 = scmp.lt.s32.totalorder %s3589_s14, %s3589_s14 }
  0x37   : > { %p3592_p0 = pnand %p3590_p13, %p4232_p8  ;;  %p3599_p7 = por %p3598_p4, %p3597_p5 }
  0x39   : > { %p3593_p2 = pneg %p3592_p0 }
  0x3b   : > { %p3600_p9 = pnand %p3599_p7, %p3593_p2 }
  0x3d   : > { %3603 = shalt.err (!%p3600_p9)
}
  0x3e   : > { %s4992_s26 = smov 128   ;;  %s4994_s20 = smov 8  }
  0x3f   : > { %3414 = dma.hbm_to_vmem [thread:$0]  (!%p4216_p6), %s5029_s4, 512, %s4205_s18, [#allocation9], %s4992_s26, %s4992_s26, %s4994_s20  }
  0x40   : > { %s5031_s5 = sld [smem:[#allocation46_spill]] }
  0x46   : > { %s3604_s14 = scalar_lea.hbm %s5031_s5, 16 }
  0x47   : > { %p3605_p4 = scmp.ne.s32.totalorder %s5031_s5, %s3604_s14  ;;  %p3611_p12 = scmp.lt.u32.totalorder %s3604_s14, %s5031_s5 }
  0x49   : > { %p3607_p10 = pnand %p3605_p4, %p4232_p8 }
  0x4b   : > { %p3608_p11 = pneg %p3607_p10 }
  0x4d   : > { %p3613_p13 = pnand %p3611_p12, %p3608_p11 }
  0x4f   : > { %3616 = shalt.err (!%p3613_p13)
}
  0x50   : > { %s3617_s18 = scalar_lea.vmem %s4220_s22, 16  ;;  %s3624_s2 = scalar_lea.vmem %s4220_s22, 32 }
  0x51   : > { %p3618_p0 = scmp.ne.s32.totalorder %s4220_s22, %s3617_s18  ;;  %p3625_p7 = scmp.lt.s32.totalorder %s4220_s22, %s4220_s22 }
  0x52   : > { %p3626_p9 = scmp.lt.s32.totalorder %s3624_s2, %s3617_s18 }
  0x53   : > { %p3620_p2 = pnand %p3618_p0, %p4232_p8 }
  0x54   : > { %p3627_p4 = por %p3626_p9, %p3625_p7 }
  0x55   : > { %p3621_p5 = pneg %p3620_p2 }
  0x57   : > { %p3628_p10 = pnand %p3627_p4, %p3621_p5 }
  0x59   : > { %3631 = shalt.err (!%p3628_p10)
}
  0x5a   : > { %3417 = dma.hbm_to_vmem [thread:$0]  (!%p4216_p6), %s5031_s5, 16, %s4220_s22, [#allocation12]  }
  0x5b   : > { %s5032_s7 = sld [smem:[#allocation48_spill]] }
  0x61   : > { %s3632_s28 = scalar_lea.hbm %s5032_s7, 512 }
  0x62   : > { %p3633_p11 = scmp.ne.s32.totalorder %s5032_s7, %s3632_s28  ;;  %p3639_p0 = scmp.lt.u32.totalorder %s3632_s28, %s5032_s7 }
  0x64   : > { %p3635_p12 = pnand %p3633_p11, %p4232_p8 }
  0x66   : > { %p3636_p13 = pneg %p3635_p12 }
  0x68   : > { %p3641_p2 = pnand %p3639_p0, %p3636_p13 }
  0x6a   : > { %3644 = shalt.err (!%p3641_p2)
}
  0x6b   : > { %s3645_s22 = scalar_lea.vmem %s4222_s25, 512  ;;  %p3653_p4 = scmp.lt.s32.totalorder %s4222_s25, %s4222_s25 }
  0x6c   : > { %p3646_p5 = scmp.ne.s32.totalorder %s4222_s25, %s3645_s22  ;;  %p3654_p10 = scmp.lt.s32.totalorder %s3645_s22, %s3645_s22 }
  0x6e   : > { %p3648_p7 = pnand %p3646_p5, %p4232_p8  ;;  %p3655_p11 = por %p3654_p10, %p3653_p4 }
  0x70   : > { %p3649_p9 = pneg %p3648_p7 }
  0x72   : > { %p3656_p12 = pnand %p3655_p11, %p3649_p9 }
  0x74   : > { %3659 = shalt.err (!%p3656_p12)
}
  0x75   : > { %3423 = dma.hbm_to_vmem [thread:$0]  (!%p4216_p6), %s5032_s7, 512, %s4222_s25, [#allocation15], %s4992_s26, %s4992_s26, %s4994_s20  }
  0x76   : > { %s4081_s3 = smov [#allocation17]   ;;  %s4082_s27 = smov [#allocation20]  }
  0x77   : > { %s459_s13 = sshll.u32 %s4081_s3, 4  ;;  %s486_s28 = sshll.u32 %s4082_s27, 4  ;;  %s460_s13 = int_to_ptr.vmem [resolvable:$true] %s459_s13  ;;  %s487_s28 = int_to_ptr.vmem [resolvable:$true] %s486_s28 }
  0x78   : > { %s5033_s9 = sld [smem:[#allocation50_spill]] }
  0x7e   : > { %s3660_s14 = scalar_lea.hbm %s5033_s9, 1024 }
  0x7f   : > { %p3661_p13 = scmp.ne.s32.totalorder %s5033_s9, %s3660_s14  ;;  %p3667_p5 = scmp.lt.u32.totalorder %s3660_s14, %s5033_s9 }
  0x81   : > { %p3663_p0 = pnand %p3661_p13, %p4232_p8 }
  0x83   : > { %p3664_p2 = pneg %p3663_p0 }
  0x85   : > { %p3669_p7 = pnand %p3667_p5, %p3664_p2 }
  0x87   : > { %3672 = shalt.err (!%p3669_p7)
}
  0x88   : > { %s3673_s25 = scalar_lea.vmem %s460_s13, 1024  ;;  %p3681_p11 = scmp.lt.s32.totalorder %s460_s13, %s460_s13 }
  0x89   : > { %p3674_p9 = scmp.ne.s32.totalorder %s460_s13, %s3673_s25  ;;  %p3682_p12 = scmp.lt.s32.totalorder %s3673_s25, %s3673_s25 }
  0x8b   : > { %p3676_p4 = pnand %p3674_p9, %p4232_p8  ;;  %p3683_p1 = por %p3682_p12, %p3681_p11 }
  0x8d   : > { %p3677_p10 = pneg %p3676_p4 }
  0x8f   : > { %p3684_p3 = pnand %p3683_p1, %p3677_p10 }
  0x91   : > { %3687 = shalt.err (!%p3684_p3)
}
  0x92   : > { %3429 = dma.hbm_to_vmem [thread:$0]  (!%p4216_p6), %s5033_s9, 1024, %s460_s13, [#allocation18], %s4992_s26, %s4992_s26, %s4994_s20  }
  0x93   : > { %s5034_s11 = sld [smem:[#allocation52_spill]] }
  0x99   : > { %s3688_s17 = scalar_lea.hbm %s5034_s11, 16 }
  0x9a   : > { %p3689_p1 = scmp.ne.s32.totalorder %s5034_s11, %s3688_s17  ;;  %p3695_p0 = scmp.lt.u32.totalorder %s3688_s17, %s5034_s11 }
  0x9c   : > { %p3691_p3 = pnand %p3689_p1, %p4232_p8 }
  0x9e   : > { %p3692_p13 = pneg %p3691_p3 }
  0xa0   : > { %p3697_p2 = pnand %p3695_p0, %p3692_p13 }
  0xa2   : > { %3700 = shalt.err (!%p3697_p2)
}
  0xa3   : > { %s3701_s2 = scalar_lea.vmem %s487_s28, 16  ;;  %s3708_s13 = scalar_lea.vmem %s487_s28, 32 }
  0xa4   : > { %p3702_p5 = scmp.ne.s32.totalorder %s487_s28, %s3701_s2  ;;  %p3709_p4 = scmp.lt.s32.totalorder %s487_s28, %s487_s28 }
  0xa5   : > { %p3710_p10 = scmp.lt.s32.totalorder %s3708_s13, %s3701_s2 }
  0xa6   : > { %p3704_p7 = pnand %p3702_p5, %p4232_p8 }
  0xa7   : > { %p3711_p11 = por %p3710_p10, %p3709_p4 }
  0xa8   : > { %p3705_p9 = pneg %p3704_p7 }
  0xaa   : > { %p3712_p12 = pnand %p3711_p11, %p3705_p9 }
  0xac   : > { %3715 = shalt.err (!%p3712_p12)
}
  0xad   : > { %3435 = dma.hbm_to_vmem [thread:$0]  (!%p4216_p6), %s5034_s11, 16, %s487_s28, [#allocation21]  }
  0xae   : > { %s3002_s0 = sadd.s32 4294967294, %s4074_s16   ;;  %s4347_s3 = sadd.s32 1, %s4074_s16  }
  0xaf   : > { %5035 = sst [smem:[#allocation38_spill]] %s4347_s3  ;;  %s48_s27 = sadd.s32 1, %s4070_s15 }
  0xb0   : > { %s45_s17 = ssub.s32 %s4074_s16, %s4347_s3  ;;  %p55_p1 = scmp.ne.s32.totalorder %s4070_s15, %s4066_s30 }
  0xb1   : > { %p46_p3 = scmp.eq.s32.totalorder %s45_s17, 0  ;;  %p56_p13 = scmp.eq.s32.totalorder %s4074_s16, 0 }
  0xb2   : > { %p61_p0 = scmp.ne.s32.totalorder %s4066_s30, %s4062_s29  ;;  %p373_p2 = scmp.eq.s32.totalorder %s4200_s19, 1 }
  0xb3   : > { %s4359_s24 = scalar_select %p46_p3, %s4070_s15, %s48_s27  }
  0xb4   : > { %p57_p5 = por %p56_p13, %p55_p1  ;;  %p5037_p7 = scmp.eq.s32.totalorder %s4200_s19, 0 }
  0xb5   : > { %5036 = sst [smem:[#allocation39_spill]] %s4359_s24  ;;  %p4367_p4 = por %p373_p2, %p55_p1 }
  0xb6   : > { %p4363_p9 = por %p5037_p7, %p61_p0  ;;  %p379_p10 = scmp.eq.s32.totalorder %s3002_s0, 1 }
  0xb7   : > { %s5039_s14 = scalar_select %p4367_p4, 1, 0 }
  0xb8   : > { %s5038_s28 = scalar_select %p4363_p9, 1, 0 }
  0xb9   : > { %p3469_p11 = scmp.lt.s32.totalorder %s4074_s16, 2  ;;  %s4991_s18 = sand.u32 1, %s4070_s15  }
  0xba   : > { %p4373_p12 = por %p379_p10, %p61_p0  ;;  %s4379_s2 = sshll.u32 %s4991_s18, 3 }
  0xbb   : > { %s4382_s13 = sshll.u32 %s4074_s16, 7  ;;  %p4384_p3 = pnand %p3469_p11, %p57_p5 }
  0xbc   : > { %s5040_s22 = scalar_select %p4373_p12, 1, 0 }
  0xbd   : > { %s5042_s25 = scalar_select %p4384_p3, 1, 0 }
  0xbe   : > { %5041 = sst [smem:[#allocation40_spill]] %s5040_s22  ;;  %s4997_s4 = sand.u32 1, %s4074_s16  }
  0xbf   : > { %s5043_s1 = sld [smem:[#allocation42_spill]]  ;;  %s545_s18 = scalar_lea.vmem [#allocation5], %s4379_s2 }
  0xc0   : > { %s552_s26 = sshll.u32 %s545_s18, 4  ;;  %s4400_s20 = scalar_lea.sflag [#allocation6], %s4997_s4  ;;  %s4396_s26 = int_to_ptr.vmem [resolvable:$true] %s552_s26 }
  0xc1   : > { %p4406_p13 = pneg %p4384_p3 }
  0xc3   : > { %s5044_s7 = scalar_select %p4406_p13, 1, 0 }
  0xc5   : > { %s4393_s17 = scalar_lea.hbm %s5043_s1, %s4382_s13  ;;  %s3721_s18 = scalar_lea.hbm %s5043_s1, 256 }
  0xc6   : > { %s3716_s5 = scalar_lea.hbm %s4393_s17, 128  ;;  %p3722_p5 = scmp.lt.u32.totalorder %s4393_s17, %s5043_s1 }
  0xc7   : > { %p3717_p1 = scmp.ne.s32.totalorder %s4393_s17, %s3716_s5  ;;  %p3723_p7 = scmp.lt.u32.totalorder %s3721_s18, %s3716_s5 }
  0xc8   : > { %p3725_p11 = scmp.lt.u32.totalorder %s3716_s5, %s4393_s17 }
  0xc9   : > { %p3719_p0 = pnand %p4406_p13, %p3717_p1  ;;  %p3724_p10 = por %p3723_p7, %p3722_p5 }
  0xcb   : > { %p3720_p2 = pneg %p3719_p0  ;;  %p3726_p12 = por %p3725_p11, %p3724_p10 }
  0xcd   : > { %p3727_p4 = pnand %p3726_p12, %p3720_p2 }
  0xcf   : > { %3730 = shalt.err (!%p3727_p4)
}
  0xd0   : > { %s3731_s4 = scalar_lea.vmem %s4396_s26, 128  ;;  %s4083_s0 = smov [#allocation5]  }
  0xd1   : > { %p3732_p1 = scmp.ne.s32.totalorder %s4396_s26, %s3731_s4  ;;  %s3736_s27 = sshll.u32 %s4083_s0, 4  ;;  %s3737_s27 = int_to_ptr.vmem [resolvable:$false] %s3736_s27 }
  0xd2   : > { %s3738_s9 = scalar_lea.vmem %s3737_s27, 256  ;;  %p3739_p6 = scmp.lt.s32.totalorder %s4396_s26, %s3737_s27 }
  0xd3   : > { %p3734_p0 = pnand %p3732_p1, %p4406_p13  ;;  %p3740_p8 = scmp.lt.s32.totalorder %s3738_s9, %s3731_s4 }
  0xd5   : > { %p3735_p9 = pneg %p3734_p0  ;;  %p3741_p5 = por %p3740_p8, %p3739_p6 }
  0xd7   : > { %p3742_p7 = pnand %p3741_p5, %p3735_p9 }
  0xd9   : > { %3745 = shalt.err (!%p3742_p7)
}
  0xda   : > { %3448 = dma.hbm_to_vmem [thread:$0]  (!%p4384_p3), %s4393_s17, 128, %s4396_s26, %s4400_s20  }
  0xdb   : > { %s4084_s5 = smov [#allocation13]   ;;  %s4085_s18 = smov [#allocation16]  }
  0xdc   : > { %s422_s11 = sshll.u32 %s4084_s5, 4  ;;  %s449_s1 = sshll.u32 %s4085_s18, 4  ;;  %s423_s11 = int_to_ptr.vmem [resolvable:$true] %s422_s11  ;;  %s4430_s1 = int_to_ptr.vmem [resolvable:$true] %s449_s1 }
  0xdd   : > { %s5045_s6 = sld [smem:[#allocation47_spill]]  ;;  %p5046_p8 = scmp.ne.s32.totalorder %s5030_s21, 0 }
  0xe3   : > { %s3746_s4 = scalar_lea.hbm %s5045_s6, 512 }
  0xe4   : > { %p3747_p6 = scmp.ne.s32.totalorder %s5045_s6, %s3746_s4  ;;  %p3753_p12 = scmp.lt.u32.totalorder %s3746_s4, %s5045_s6 }
  0xe6   : > { %p3749_p9 = pnand %p3747_p6, %p5046_p8 }
  0xe8   : > { %p3750_p4 = pneg %p3749_p9 }
  0xea   : > { %p3755_p2 = pnand %p3753_p12, %p3750_p4 }
  0xec   : > { %3758 = shalt.err (!%p3755_p2)
}
  0xed   : > { %s3759_s17 = scalar_lea.vmem %s423_s11, 512  ;;  %p3767_p0 = scmp.lt.s32.totalorder %s423_s11, %s423_s11 }
  0xee   : > { %p3760_p10 = scmp.ne.s32.totalorder %s423_s11, %s3759_s17  ;;  %p3768_p5 = scmp.lt.s32.totalorder %s3759_s17, %s3759_s17 }
  0xf0   : > { %p3762_p11 = pnand %p3760_p10, %p5046_p8  ;;  %p3769_p7 = por %p3768_p5, %p3767_p0 }
  0xf2   : > { %p3763_p1 = pneg %p3762_p11 }
  0xf4   : > { %p3770_p3 = pnand %p3769_p7, %p3763_p1 }
  0xf6   : > { %3773 = shalt.err (!%p3770_p3)
}
  0xf7   : > { %p5047_p6 = scmp.ne.s32.totalorder %s5028_s23, 0  ;;  %s5048_s24 = smov 8  }
  0xf8   : > { %s5049_s5 = smov 128   ;;  %s5050_s8 = sld [smem:[#allocation49_spill]] }
  0xf9   : > { %3420 = dma.hbm_to_vmem [thread:$0]  (!%p5047_p6), %s5045_s6, 512, %s423_s11, [#allocation12], %s5049_s5, %s5049_s5, %s5048_s24  }
  0xfe   : > { %s3774_s4 = scalar_lea.hbm %s5050_s8, 16 }
  0xff   : > { %p3775_p9 = scmp.ne.s32.totalorder %s5050_s8, %s3774_s4  ;;  %p3781_p12 = scmp.lt.u32.totalorder %s3774_s4, %s5050_s8 }
 0x101   : > { %p3777_p3 = pnand %p3775_p9, %p5046_p8 }
 0x103   : > { %p3778_p4 = pneg %p3777_p3 }
 0x105   : > { %p3783_p2 = pnand %p3781_p12, %p3778_p4 }
 0x107   : > { %3786 = shalt.err (!%p3783_p2)
}
 0x108   : > { %s3787_s11 = scalar_lea.vmem %s4430_s1, 16  ;;  %s3794_s3 = scalar_lea.vmem %s4430_s1, 32 }
 0x109   : > { %p3788_p10 = scmp.ne.s32.totalorder %s4430_s1, %s3787_s11  ;;  %p3795_p0 = scmp.lt.s32.totalorder %s4430_s1, %s4430_s1 }
 0x10a   : > { %p3796_p5 = scmp.lt.s32.totalorder %s3794_s3, %s3787_s11 }
 0x10b   : > { %p3790_p11 = pnand %p3788_p10, %p5046_p8 }
 0x10c   : > { %p3797_p7 = por %p3796_p5, %p3795_p0 }
 0x10d   : > { %p3791_p1 = pneg %p3790_p11 }
 0x10f   : > { %p3798_p9 = pnand %p3797_p7, %p3791_p1 }
 0x111   : > { %3801 = shalt.err (!%p3798_p9)
}
 0x112   : > { %3426 = dma.hbm_to_vmem [thread:$0]  (!%p5047_p6), %s5050_s8, 16, %s4430_s1, [#allocation15]  }
 0x113   : > { %s4086_s0 = smov [#allocation19]   ;;  %s4087_s4 = smov [#allocation22]  }
 0x114   : > { %s472_s27 = sshll.u32 %s4086_s0, 4  ;;  %s496_s9 = sshll.u32 %s4087_s4, 4  ;;  %s473_s27 = int_to_ptr.vmem [resolvable:$true] %s472_s27  ;;  %s4477_s9 = int_to_ptr.vmem [resolvable:$true] %s496_s9 }
 0x115   : > { %s5051_s10 = sld [smem:[#allocation51_spill]] }
 0x11b   : > { %s3802_s11 = scalar_lea.hbm %s5051_s10, 512 }
 0x11c   : > { %p3803_p3 = scmp.ne.s32.totalorder %s5051_s10, %s3802_s11  ;;  %p3809_p2 = scmp.lt.u32.totalorder %s3802_s11, %s5051_s10 }
 0x11e   : > { %p3805_p4 = pnand %p3803_p3, %p5046_p8 }
 0x120   : > { %p3806_p12 = pneg %p3805_p4 }
 0x122   : > { %p3811_p10 = pnand %p3809_p2, %p3806_p12 }
 0x124   : > { %3814 = shalt.err (!%p3811_p10)
}
 0x125   : > { %s3815_s18 = scalar_lea.vmem %s473_s27, 512  ;;  %p3823_p5 = scmp.lt.s32.totalorder %s473_s27, %s473_s27 }
 0x126   : > { %p3816_p11 = scmp.ne.s32.totalorder %s473_s27, %s3815_s18  ;;  %p3824_p7 = scmp.lt.s32.totalorder %s3815_s18, %s3815_s18 }
 0x128   : > { %p3818_p1 = pnand %p3816_p11, %p5046_p8  ;;  %p3825_p9 = por %p3824_p7, %p3823_p5 }
 0x12a   : > { %p3819_p0 = pneg %p3818_p1 }
 0x12c   : > { %p3826_p13 = pnand %p3825_p9, %p3819_p0 }
 0x12e   : > { %3829 = shalt.err (!%p3826_p13)
}
 0x12f   : > { %3432 = dma.hbm_to_vmem [thread:$0]  (!%p5047_p6), %s5051_s10, 512, %s473_s27, [#allocation18], %s5049_s5, %s5049_s5, %s5048_s24  }
 0x130   : > { %s3830_s17 = scalar_lea.hbm %s4980_s12, 1024 }
 0x131   : > { %p3831_p3 = scmp.ne.s32.totalorder %s4980_s12, %s3830_s17  ;;  %p3837_p12 = scmp.lt.u32.totalorder %s3830_s17, %s4980_s12 }
 0x133   : > { %p3833_p13 = pnand %p3831_p3, %p5046_p8 }
 0x135   : > { %p3834_p4 = pneg %p3833_p13 }
 0x137   : > { %p3839_p2 = pnand %p3837_p12, %p3834_p4 }
 0x139   : > { %3842 = shalt.err (!%p3839_p2)
}
 0x13a   : > { %s3843_s27 = scalar_lea.vmem %s4477_s9, 1024  ;;  %p3851_p0 = scmp.lt.s32.totalorder %s4477_s9, %s4477_s9 }
 0x13b   : > { %p3844_p10 = scmp.ne.s32.totalorder %s4477_s9, %s3843_s27  ;;  %p3852_p5 = scmp.lt.s32.totalorder %s3843_s27, %s3843_s27 }
 0x13d   : > { %p3846_p11 = pnand %p3844_p10, %p5046_p8  ;;  %p3853_p7 = por %p3852_p5, %p3851_p0 }
 0x13f   : > { %p3847_p1 = pneg %p3846_p11 }
 0x141   : > { %p3854_p9 = pnand %p3853_p7, %p3847_p1 }
 0x143   : > { %3857 = shalt.err (!%p3854_p9)
}
 0x144   : > { %3438 = dma.hbm_to_vmem [thread:$0]  (!%p5047_p6), %s4980_s12, 1024, %s4477_s9, [#allocation21], %s5049_s5, %s5049_s5, %s5048_s24  }
 0x145   : > { %s4088_s0 = smov [#allocation23]   ;;  %s5052_s11 = sld [smem:[#allocation41_spill]] }
 0x146   : > { %s509_s4 = sshll.u32 %s4088_s0, 4  ;;  %s5053_s27 = sld [smem:[#allocation53_spill]]  ;;  %s510_s4 = int_to_ptr.vmem [resolvable:$true] %s509_s4 }
 0x14b   : > { %s4530_s3 = scalar_lea.hbm %s5052_s11, %s4382_s13 }
 0x14c   : > { %s3858_s8 = scalar_lea.hbm %s5053_s27, 256 }
 0x14d   : > { %p3859_p3 = scmp.ne.s32.totalorder %s5053_s27, %s3858_s8  ;;  %p3865_p12 = scmp.lt.u32.totalorder %s3858_s8, %s5053_s27 }
 0x14f   : > { %p3861_p13 = pnand %p3859_p3, %p5046_p8 }
 0x151   : > { %p3862_p4 = pneg %p3861_p13 }
 0x153   : > { %p3867_p2 = pnand %p3865_p12, %p3862_p4 }
 0x155   : > { %3870 = shalt.err (!%p3867_p2)
}
 0x156   : > { %s3871_s6 = scalar_lea.vmem %s510_s4, 256  ;;  %p3879_p0 = scmp.lt.s32.totalorder %s510_s4, %s510_s4 }
 0x157   : > { %p3872_p10 = scmp.ne.s32.totalorder %s510_s4, %s3871_s6  ;;  %p3880_p5 = scmp.lt.s32.totalorder %s3871_s6, %s3871_s6 }
 0x159   : > { %p3874_p11 = pnand %p3872_p10, %p5046_p8  ;;  %p3881_p7 = por %p3880_p5, %p3879_p0 }
 0x15b   : > { %p3875_p1 = pneg %p3874_p11 }
 0x15d   : > { %p3882_p9 = pnand %p3881_p7, %p3875_p1 }
 0x15f   : > { %3885 = shalt.err (!%p3882_p9)
}
 0x160   : > { %3441 = dma.hbm_to_vmem [thread:$0]  (!%p5047_p6), %s5053_s27, 256, %s510_s4, [#allocation24], %s5049_s5, %s5049_s5, %s5048_s24  }
 0x161   : > { %s527_s29 = scalar_lea.vmem [#allocation2], %s4379_s2  ;;  %s5054_s26 = sld [smem:[#allocation43_spill]] }
 0x162   : > { %s534_s21 = sshll.u32 %s527_s29, 4  ;;  %s5055_s22 = sand.u32 1, %s4070_s15   ;;  %s4554_s21 = int_to_ptr.vmem [resolvable:$true] %s534_s21 }
 0x163   : > { %s524_s1 = scalar_lea.sflag [#allocation3], %s5055_s22  ;;  %s3886_s9 = scalar_lea.hbm %s4530_s3, 128 }
 0x164   : > { %p3887_p8 = scmp.ne.s32.totalorder %s4530_s3, %s3886_s9  ;;  %p5056_p3 = scmp.ne.s32.totalorder %s5044_s7, 0 }
 0x165   : > { %s3891_s24 = scalar_lea.hbm %s5052_s11, 256  ;;  %p3892_p6 = scmp.lt.u32.totalorder %s4530_s3, %s5052_s11 }
 0x166   : > { %p3889_p13 = pnand %p3887_p8, %p5056_p3  ;;  %p3893_p12 = scmp.lt.u32.totalorder %s3891_s24, %s3886_s9 }
 0x167   : > { %s4560_s17 = scalar_lea.hbm %s5054_s26, %s4382_s13  ;;  %p3895_p10 = scmp.lt.u32.totalorder %s3886_s9, %s4530_s3 }
 0x168   : > { %p3890_p4 = pneg %p3889_p13  ;;  %p3894_p2 = por %p3893_p12, %p3892_p6 }
 0x16a   : > { %p3896_p11 = por %p3895_p10, %p3894_p2 }
 0x16c   : > { %p3897_p1 = pnand %p3896_p11, %p3890_p4 }
 0x16e   : > { %3900 = shalt.err (!%p3897_p1)
}
 0x16f   : > { %s3901_s10 = scalar_lea.vmem %s4554_s21, 128  ;;  %s4089_s8 = smov [#allocation2]  }
 0x170   : > { %p3902_p0 = scmp.ne.s32.totalorder %s4554_s21, %s3901_s10  ;;  %s3906_s29 = sshll.u32 %s4089_s8, 4  ;;  %s3907_s29 = int_to_ptr.vmem [resolvable:$false] %s3906_s29 }
 0x171   : > { %s3908_s23 = scalar_lea.vmem %s3907_s29, 256  ;;  %p3909_p9 = scmp.lt.s32.totalorder %s4554_s21, %s3907_s29 }
 0x172   : > { %p3904_p5 = pnand %p3902_p0, %p5056_p3  ;;  %p3910_p8 = scmp.lt.s32.totalorder %s3908_s23, %s3901_s10 }
 0x174   : > { %p3905_p7 = pneg %p3904_p5  ;;  %p3911_p13 = por %p3910_p8, %p3909_p9 }
 0x176   : > { %p3912_p6 = pnand %p3911_p13, %p3905_p7 }
 0x178   : > { %3915 = shalt.err (!%p3912_p6)
}
 0x179   : > { %p5057_p4 = scmp.ne.s32.totalorder %s5042_s25, 0  ;;  %s563_s0 = scalar_lea.vmem [#allocation7], %s4379_s2 }
 0x17a   : > { %s570_s22 = sshll.u32 %s563_s0, 4  ;;  %s5058_s6 = sld [smem:[#allocation44_spill]]  ;;  %s571_s22 = int_to_ptr.vmem [resolvable:$true] %s570_s22 }
 0x17b   : > { %3445 = dma.hbm_to_vmem [thread:$0]  (!%p5057_p4), %s4530_s3, 128, %s4554_s21, %s524_s1  }
 0x17c   : > { %s3916_s5 = scalar_lea.hbm %s4560_s17, 128  ;;  %s3921_s8 = scalar_lea.hbm %s5054_s26, 256 }
 0x17d   : > { %p3917_p12 = scmp.ne.s32.totalorder %s4560_s17, %s3916_s5  ;;  %p3922_p11 = scmp.lt.u32.totalorder %s4560_s17, %s5054_s26 }
 0x17e   : > { %p3923_p1 = scmp.lt.u32.totalorder %s3921_s8, %s3916_s5  ;;  %p3925_p5 = scmp.lt.u32.totalorder %s3916_s5, %s4560_s17 }
 0x17f   : > { %p3919_p2 = pnand %p3917_p12, %p5056_p3 }
 0x180   : > { %s4590_s24 = scalar_lea.hbm %s5058_s6, %s4382_s13  ;;  %p3924_p0 = por %p3923_p1, %p3922_p11 }
 0x181   : > { %p3920_p10 = pneg %p3919_p2 }
 0x182   : > { %p3926_p7 = por %p3925_p5, %p3924_p0 }
 0x184   : > { %p3927_p9 = pnand %p3926_p7, %p3920_p10 }
 0x186   : > { %3930 = shalt.err (!%p3927_p9)
}
 0x187   : > { %s3931_s13 = scalar_lea.vmem %s571_s22, 128  ;;  %s4090_s3 = smov [#allocation7]  }
 0x188   : > { %p3932_p8 = scmp.ne.s32.totalorder %s571_s22, %s3931_s13  ;;  %s3936_s21 = sshll.u32 %s4090_s3, 4  ;;  %s3937_s21 = int_to_ptr.vmem [resolvable:$false] %s3936_s21 }
 0x189   : > { %s3938_s1 = scalar_lea.vmem %s3937_s21, 256  ;;  %p3939_p12 = scmp.lt.s32.totalorder %s571_s22, %s3937_s21 }
 0x18a   : > { %p3934_p13 = pnand %p3932_p8, %p5056_p3  ;;  %p3940_p2 = scmp.lt.s32.totalorder %s3938_s1, %s3931_s13 }
 0x18c   : > { %p3935_p6 = pneg %p3934_p13  ;;  %p3941_p4 = por %p3940_p2, %p3939_p12 }
 0x18e   : > { %p3942_p1 = pnand %p3941_p4, %p3935_p6 }
 0x190   : > { %3945 = shalt.err (!%p3942_p1)
}
 0x191   : > { %p5059_p11 = scmp.ne.s32.totalorder %s5042_s25, 0  ;;  %s581_s0 = scalar_lea.vmem [#allocation8], %s4379_s2 }
 0x192   : > { %s588_s9 = sshll.u32 %s581_s0, 4  ;;  %s5060_s18 = sand.u32 1, %s4074_s16   ;;  %s589_s9 = int_to_ptr.vmem [resolvable:$true] %s588_s9 }
 0x193   : > { %3451 = dma.hbm_to_vmem [thread:$0]  (!%p5059_p11), %s4560_s17, 128, %s571_s22, %s4400_s20  }
 0x194   : > { %s578_s5 = scalar_lea.sflag [#allocation9], %s5060_s18  ;;  %s3946_s4 = scalar_lea.hbm %s4590_s24, 128 }
 0x195   : > { %p3947_p4 = scmp.ne.s32.totalorder %s4590_s24, %s3946_s4  ;;  %s3951_s29 = scalar_lea.hbm %s5058_s6, 256 }
 0x196   : > { %p3952_p5 = scmp.lt.u32.totalorder %s4590_s24, %s5058_s6  ;;  %p3953_p7 = scmp.lt.u32.totalorder %s3951_s29, %s3946_s4 }
 0x197   : > { %p3949_p10 = pnand %p3947_p4, %p5056_p3  ;;  %p3955_p8 = scmp.lt.u32.totalorder %s3946_s4, %s4590_s24 }
 0x198   : > { %p3954_p9 = por %p3953_p7, %p3952_p5 }
 0x199   : > { %p3950_p0 = pneg %p3949_p10 }
 0x19a   : > { %p3956_p13 = por %p3955_p8, %p3954_p9 }
 0x19c   : > { %p3957_p6 = pnand %p3956_p13, %p3950_p0 }
 0x19e   : > { %3960 = shalt.err (!%p3957_p6)
}
 0x19f   : > { %s3961_s20 = scalar_lea.vmem %s589_s9, 128  ;;  %s4091_s2 = smov [#allocation8]  }
 0x1a0   : > { %p3962_p12 = scmp.ne.s32.totalorder %s589_s9, %s3961_s20  ;;  %s3966_s17 = sshll.u32 %s4091_s2, 4  ;;  %s3967_s17 = int_to_ptr.vmem [resolvable:$false] %s3966_s17 }
 0x1a1   : > { %s3968_s22 = scalar_lea.vmem %s3967_s17, 256  ;;  %p3969_p4 = scmp.lt.s32.totalorder %s589_s9, %s3967_s17 }
 0x1a2   : > { %p3964_p2 = pnand %p3962_p12, %p5056_p3  ;;  %p3970_p10 = scmp.lt.s32.totalorder %s3968_s22, %s3961_s20 }
 0x1a4   : > { %p3965_p1 = pneg %p3964_p2  ;;  %p3971_p11 = por %p3970_p10, %p3969_p4 }
 0x1a6   : > { %p3972_p5 = pnand %p3971_p11, %p3965_p1 }
 0x1a8   : > { %3975 = shalt.err (!%p3972_p5)
}
 0x1a9   : > { %p5061_p7 = scmp.ne.s32.totalorder %s5042_s25, 0  ;;  %s5062_s3 = sld [smem:[#allocation37_spill]] }
 0x1ab   : > { %3454 = dma.hbm_to_vmem [thread:$0]  (!%p5061_p7), %s4590_s24, 128, %s589_s9, %s578_s5  }
 0x1af   : > { %p5063_p0 = scmp.ne.s32.totalorder %s5062_s3, 0 }
 0x1b0   : > { %s4633_s7 = sand.u32 (!%p5063_p0), 1, %s4066_s30   ;;  %p5064_p3 = scmp.ne.s32.totalorder (!%p5063_p0), %s5038_s28, 0 }
 0x1b1   : > { %597 = sbr.rel (%p5063_p0) target bundleno = 4814 (0x12ce), region = 76  ;;  %s4636_s21 = sshll.u32 (!%p5063_p0), %s4633_s7, 3 }
 0x1b2   : > { %s600_s1 = scalar_lea.sflag (!%p5063_p0), [#allocation3], %s4633_s7  ;;  %s603_s0 = scalar_lea.vmem (!%p5063_p0), [#allocation2], %s4636_s21 }
 0x1b8   : > { %4021 = dma.done.wait (%p5064_p3), %s600_s1, 128  }
 0x1b9   : > { %4023 = vsyncadd (%p5064_p3), %s600_s1, 4294967168  ;;  %s608_s25 = sand.u32 1, %s4200_s19   ;;  %s612_s9 = scalar_lea.vmem [#allocation5], %s4636_s21 }
 0x1ba   : > { %s609_s24 = scalar_lea.sflag [#allocation6], %s608_s25 }
 0x1bb   : > { %4025 = dma.done.wait (%p5064_p3), %s609_s24, 256  }
 0x1bc   : > { %4027 = vsyncadd (%p5064_p3), %s609_s24, 4294967040  ;;  %s621_s18 = scalar_lea.vmem [#allocation7], %s4636_s21  ;;  %s627_s5 = scalar_lea.sflag [#allocation9], %s608_s25 }
 0x1bd   : > { %s630_s4 = scalar_lea.vmem [#allocation8], %s4636_s21 }
 0x1be   : > { %4029 = dma.done.wait (%p5064_p3), %s627_s5, 128  }
 0x1bf   : > { %4031 = vsyncadd (%p5064_p3), %s627_s5, 4294967168  ;;  %p5065_p11 = scmp.eq.s32.totalorder %s4200_s19, 0 }
 0x1c1   : > { %4033 = dma.done.wait (%p5065_p11), [#allocation9], 512   ;;  %p5066_p9 = pmov %p5065_p11 }
 0x1c3   : > { %4035 = vsyncadd (%p5066_p9), [#allocation9], 4294966784  ;;  %p5067_p8 = pmov %p5066_p9 }
 0x1c5   : > { %4037 = dma.done.wait (%p5067_p8), [#allocation12], 528   ;;  %p5068_p13 = pmov %p5067_p8 }
 0x1c6   : > { %p5069_p6 = pmov %p5067_p8 }
 0x1c7   : > { %4039 = vsyncadd (%p5068_p13), [#allocation12], 4294966768 }
 0x1c8   : > { %4041 = dma.done.wait (%p5069_p6), [#allocation15], 528   ;;  %p5070_p12 = pmov %p5069_p6 }
 0x1c9   : > { %p5071_p2 = pmov %p5069_p6 }
 0x1ca   : > { %4043 = vsyncadd (%p5070_p12), [#allocation15], 4294966768 }
 0x1cb   : > { %4045 = dma.done.wait (%p5071_p2), [#allocation18], 1536   ;;  %p5072_p1 = pmov %p5071_p2 }
 0x1cd   : > { %4047 = vsyncadd (%p5072_p1), [#allocation18], 4294965760  ;;  %p5073_p4 = pmov %p5072_p1 }
 0x1ce   : > { %p5074_p10 = pmov %p5072_p1 }
 0x1cf   : > { %4049 = dma.done.wait (%p5073_p4), [#allocation21], 1040  }
 0x1d0   : > { %4051 = vsyncadd (%p5074_p10), [#allocation21], 4294966256  ;;  %p5075_p5 = pmov %p5072_p1 }
 0x1d1   : > { %p5076_p7 = pmov %p5072_p1 }
 0x1d2   : > { %4053 = dma.done.wait (%p5075_p5), [#allocation24], 256  }
 0x1d3   : > { %4055 = vsyncadd (%p5076_p7), [#allocation24], 4294967040  ;;  %v4092_v0 = vmov 0.0|0.0   ;;  %vm4093_vm0 = vmmov 0   ;;  %v4094_v1 = vmov 0.0   ;;  %v736_v2 = vld [vmem:[#allocation10] sm:$0xff] }
 0x1d4   : > { %3313 = vmatprep.subr.bf16.mxu1 %v4092_v0  ;;  %3156 = vmatprep.mubr.msk.f32.mxu1 %vm4093_vm0, %v4094_v1  ;;  %v737_v3 = vld [vmem:[#allocation10 + $0x8] sm:$0xff]  ;;  %v738_v4 = vld [vmem:[#allocation10 + $0x10] sm:$0xff]  ;;  %v739_v6 = vld [vmem:[#allocation10 + $0x18] sm:$0xff]  ;;  %vm747_vm1 = vcmask 261120   ;;  %s4095_s28 = smov 104   ;;  %s4096_s10 = smov 120  }
 0x1d5   : > { %3169 = vmatprep.subr.mxu0 %v4094_v1  ;;  %3171 = vmatprep.mubr.msk.f32.mxu0 %vm4093_vm0, %v4094_v1  ;;  %v3314_v5 = vpack.c.bf16 %v737_v3, %v736_v2  ;;  %v3317_v7 = vpack.c.bf16 %v739_v6, %v738_v4  ;;  %v4689_v8 = vld [vmem:[%s603_s0] sm:$0xff]  ;;  %s4097_s8 = smov 96   ;;  %s4098_s29 = smov 112   ;;  %vm838_vm2 = vcmask 64512   ;;  %vm1502_vm3 = vcmask 130048  }
 0x1d6   : > { %v3039_v9 = vld [vmem:[#allocation11] ss:$0 sm:$0xff]  ;;  %s4099_s23 = smov 64   ;;  %s4100_s13 = smov 8   ;;  %vm1504_vm4 = vcmask 195584   ;;  %vm2658_vm5 = vcmask 523264  }
 0x1d7   : > { %3315 = vmatpush3.bf16.msra.mxu1 %v3314_v5  ;;  %v732_v24 = vld [vmem:[%s621_s18] sm:$0xff]  ;;  %s4101_s20 = smov 16   ;;  %s4102_s2 = smov 24  }
 0x1d8   : > { %3316 = vmatprep.subr.bf16.mxu1 %v4092_v0  ;;  %s3074_s17 = sshll.u32 %s4200_s19, 7  ;;  %s729_s22 = scalar_lea.vmem [#allocation25], %s4636_s21 }
 0x1d9   : > { %s2771_s3 = sshll.u32 %s729_s22, 4  ;;  %s5077_s25 = sld [smem:[#allocation54_spill]]  ;;  %s4925_s3 = int_to_ptr.vmem [resolvable:$true] %s2771_s3 }
 0x1da   : > { %s3976_s18 = scalar_lea.vmem %s4925_s3, 128  ;;  %p5078_p3 = scmp.ne.s32.totalorder %s5039_s14, 0 }
 0x1db   : > { %3318 = vmatpush3.bf16.msra.mxu1 %v3317_v7  ;;  %p3977_p0 = scmp.ne.s32.totalorder %s4925_s3, %s3976_s18  ;;  %s4103_s19 = smov [#allocation25]  }
 0x1dc   : > { %3159 = vmatprep.subr.mxu1 %v4094_v1  ;;  %s3980_s21 = sshll.u32 %s4103_s19, 4  ;;  %s3981_s21 = int_to_ptr.vmem [resolvable:$false] %s3980_s21 }
 0x1dd   : > { %p3978_p11 = pnand %p3977_p0, %p5078_p3  ;;  %s3982_s5 = scalar_lea.vmem %s3981_s21, 256 }
 0x1de   : > { %3157 = vmatmul.mubr.msk.f32.vlgmr.msra.gmra.mrb[0].mxu1 %vm747_vm1, %v4689_v8  ;;  %p3983_p8 = scmp.lt.s32.totalorder %s4925_s3, %s3981_s21  ;;  %p3984_p13 = scmp.lt.s32.totalorder %s3982_s5, %s3976_s18 }
 0x1df   : > { %3161 = vmatprep.mubr.msk.f32.mxu1 %vm4093_vm0, %v4094_v1  ;;  %s4923_s24 = scalar_lea.hbm %s5077_s25, %s3074_s17  ;;  %p3979_p9 = pneg %p3978_p11 }
 0x1e0   : > { %p3985_p6 = por %p3984_p13, %p3983_p8 }
 0x1e2   : > { %p3986_p12 = pnand %p3985_p6, %p3979_p9 }
 0x2b1   : > { %v817_v10 = vpop.f32.mrb[0].mxu1 }
 0x2b2   : > { %v4696_v11 = vadd.f32 %v3039_v9, %v817_v10  ;;  %v3158_v12 = vpop.f32.mrb[1].mxu1 }
 0x2b4   : > { %834 = vrot.lane.b32.xlu1 %v4696_v11, %s4095_s28  ;;  %830 = vrot.lane.b32.xlu0 %v4696_v11, %s4096_s10  ;;  %v821_v13 = vmul.f32 0.35355338, %v4696_v11 }
 0x2b8   : > { %836 = vrot.lane.b32.xlu1 %v4696_v11, %s4097_s8  ;;  %832 = vrot.lane.b32.xlu0 %v4696_v11, %s4098_s29 }
 0x2bc   : > { %823 = vrot.lane.b32.xlu1 %v821_v13, %s4096_s10 }
 0x326   : > { %v4708_v14 = vpop.permute.xlu1 %834  ;;  %v4710_v15 = vpop.permute.xlu0 %830 }
 0x327   : > { %913 = vrot.lane.b32.xlu0 %v4710_v15, %s4097_s8  ;;  %1065 = vrot.lane.b32.xlu1 %v4708_v14, %s4097_s8 }
 0x32a   : > { %v837_v16 = vpop.permute.xlu1 %836  ;;  %v4716_v17 = vpop.permute.xlu0 %832 }
 0x32b   : > { %3160 = vmatpush3.xpose.msk.msra.mxu1 %vm838_vm2, %v837_v16  ;;  %989 = vrot.lane.b32.xlu0 %v4716_v17, %s4097_s8 }
 0x32c   : > { %827 = vrot.lane.b32.xlu1 %v821_v13, %s4095_s28  ;;  %3164 = vmatprep.subr.mxu1 %v4094_v1 }
 0x32e   : > { %3162 = vmatmul.mubr.msk.f32.vlgmr.msra.gmra.mrb[2].mxu1 %vm838_vm2, %v821_v13  ;;  %v824_v18 = vpop.permute.xlu1 %823 }
 0x32f   : > { %825 = vrot.lane.b32.xlu0 %v821_v13, %s4098_s29  ;;  %3166 = vmatprep.mubr.msk.f32.mxu1 %vm4093_vm0, %v4094_v1 }
 0x399   : > { %v914_v19 = vpop.permute.xlu0 %913  ;;  %v1066_v20 = vpop.permute.xlu1 %1065 }
 0x39a   : > { %3165 = vmatpush3.xpose.msk.msra.mxu1 %vm838_vm2, %v914_v19  ;;  %v1507_v19 = vld [vmem:[#allocation17 + $0x8] sm:$0xff] }
 0x39b   : > { %3174 = vmatprep.subr.mxu1 %v4094_v1 }
 0x39d   : > { %v990_v21 = vpop.permute.xlu0 %989  ;;  %3167 = vmatmul.mubr.msk.f32.vlgmr.msra.gmra.mrb[4].mxu1 %vm838_vm2, %v824_v18  ;;  %v1506_v18 = vld [vmem:[#allocation17] sm:$0xff] }
 0x39e   : > { %3170 = vmatpush3.xpose.msk.msra.mxu0 %vm838_vm2, %v990_v21  ;;  %3175 = vmatpush3.xpose.msk.msra.mxu1 %vm838_vm2, %v1066_v20  ;;  %v828_v22 = vpop.permute.xlu1 %827  ;;  %v3320_v20 = vpack.c.bf16 %v1507_v19, %v1506_v18  ;;  %v1508_v21 = vld [vmem:[#allocation17 + $0x10] sm:$0xff] }
 0x39f   : > { %3176 = vmatprep.mubr.msk.f32.mxu1 %vm4093_vm0, %v4094_v1  ;;  %3179 = vmatprep.subr.mxu0 %v4094_v1 }
 0x3a0   : > { %3184 = vmatprep.subr.mxu1 %v4094_v1 }
 0x3a1   : > { %v826_v23 = vpop.permute.xlu0 %825  ;;  %3177 = vmatmul.mubr.msk.f32.vlgmr.msra.gmra.mrb[6].mxu1 %vm838_vm2, %v828_v22  ;;  %v1509_v22 = vld [vmem:[#allocation17 + $0x18] sm:$0xff] }
 0x3a2   : > { %3172 = vmatmul.mubr.msk.f32.vlgmr.msra.gmra.mrb[0].mxu0 %vm838_vm2, %v826_v23  ;;  %3186 = vmatprep.mubr.msk.f32.mxu1 %vm4093_vm0, %v4094_v1  ;;  %v3323_v23 = vpack.c.bf16 %v1509_v22, %v1508_v21 }
 0x3a3   : > { %3181 = vmatprep.mubr.msk.f32.mxu0 %vm4093_vm0, %v4094_v1 }
 0x401   : > { %v909_v25 = vpop.f32.mrb[2].mxu1 }
 0x402   : > { %v910_v26 = vadd.f32 %v909_v25, %v732_v24  ;;  %v3163_v27 = vpop.f32.mrb[3].mxu1 }
 0x404   : > { %v1141_v28 = vsel %vm838_vm2, %v910_v26, -inf }
 0x405   : > { %1142 = vmax.xlane.f32.xlu0 %v1141_v28 }
 0x470   : > { %v985_v29 = vpop.f32.mrb[4].mxu1 }
 0x471   : > { %v986_v30 = vadd.f32 %v985_v29, %v732_v24  ;;  %v3168_v31 = vpop.f32.mrb[5].mxu1 }
 0x473   : > { %v1144_v32 = vsel %vm838_vm2, %v986_v30, -inf }
 0x474   : > { %1145 = vmax.xlane.f32.xlu1 %v1144_v32  ;;  %v1137_v33 = vpop.f32.mrb[6].mxu1 }
 0x475   : > { %v1061_v34 = vpop.f32.mrb[0].mxu0  ;;  %v3178_v35 = vpop.f32.mrb[7].mxu1  ;;  %v1138_v38 = vadd.f32 %v1137_v33, %v732_v24 }
 0x476   : > { %v1062_v36 = vadd.f32 %v1061_v34, %v732_v24  ;;  %v3173_v37 = vpop.f32.mrb[1].mxu0 }
 0x477   : > { %v1150_v40 = vsel %vm838_vm2, %v1138_v38, -inf }
 0x478   : > { %v1147_v39 = vsel %vm838_vm2, %v1062_v36, -inf }
 0x479   : > { %1148 = vmax.xlane.f32.xlu0 %v1147_v39  ;;  %v4790_v39 = vld [vmem:[#allocation23] sm:$0xff] }
 0x47d   : > { %1151 = vmax.xlane.f32.xlu0 %v1150_v40 }
 0x485   : > { %1185 = vrot.lane.b32.xlu1 %v4696_v11, %s4099_s23 }
 0x492   : > { %v1143_v41 = vpop.xlane.xlu0 %1142 }
 0x493   : > { %v1153_v42 = vsub.f32 %v910_v26, %v1143_v41 }
 0x495   : > { %v1157_v43 = vmul.f32 1.442695, %v1153_v42 }
 0x497   : > { %3536 = vpow2.f32 %v1157_v43 }
 0x4a1   : > { %v3537_v44 = vpop.eup %3536 }
 0x4a2   : > { %v1165_v45 = vsel %vm838_vm2, %v3537_v44, 0.0 }
 0x4a9   : > { %1166 = vadd.xlane.f32.xlu1 %v1165_v45 }
 0x501   : > { %v1146_v46 = vpop.xlane.xlu1 %1145 }
 0x502   : > { %v1154_v47 = vsub.f32 %v986_v30, %v1146_v46 }
 0x504   : > { %v1159_v48 = vmul.f32 1.442695, %v1154_v47 }
 0x505   : > { %v1186_v49 = vpop.permute.xlu1 %1185 }
 0x506   : > { %3538 = vpow2.f32 %v1159_v48  ;;  %v1149_v50 = vpop.xlane.xlu0 %1148  ;;  %3180 = vmatpush3.msra.mxu0 %v1186_v49 }
 0x507   : > { %v1155_v51 = vsub.f32 %v1062_v36, %v1149_v50  ;;  %3189 = vmatprep.subr.mxu0 %v4094_v1  ;;  %v1510_v36 = vlaneseq }
 0x509   : > { %v1161_v52 = vmul.f32 1.442695, %v1155_v51  ;;  %v4787_v37 = vshrl.u32 %v1510_v36, 7  ;;  %v1694_v51 = vld [vmem:[#allocation14] sm:$0xff] }
 0x50a   : > { %v1152_v53 = vpop.xlane.xlu0 %1151 }
 0x50b   : > { %3540 = vpow2.f32 %v1161_v52  ;;  %v1156_v54 = vsub.f32 %v1138_v38, %v1152_v53  ;;  %v1512_v38 = vsub.s32 1, %v4787_v37  ;;  %v1695_v52 = vld [vmem:[#allocation14 + $0x8] sm:$0xff]  ;;  %v1618_v18 = vsub.s32 0, %v4787_v37 }
 0x50c   : > { %v3332_v53 = vpack.c.bf16 %v1695_v52, %v1694_v51 }
 0x50d   : > { %v1163_v55 = vmul.f32 1.442695, %v1156_v54  ;;  %v1513_v40 = vrot.slane %v4790_v39, %v1512_v38  ;;  %v1696_v54 = vld [vmem:[#allocation14 + $0x10] sm:$0xff]  ;;  %v1619_v19 = vrot.slane %v4790_v39, %v1618_v18 }
 0x50f   : > { %3542 = vpow2.f32 %v1163_v55  ;;  %v1697_v55 = vld [vmem:[#allocation14 + $0x18] sm:$0xff] }
 0x510   : > { %v3539_v56 = vpop.eup %3538 }
 0x511   : > { %v1168_v57 = vsel %vm838_vm2, %v3539_v56, 0.0 }
 0x512   : > { %1169 = vadd.xlane.f32.xlu0 %v1168_v57  ;;  %v1613_v57 = vld [vmem:[#allocation13 + $0x8] sm:$0xff] }
 0x515   : > { %v3541_v58 = vpop.eup %3540 }
 0x516   : > { %v1171_v59 = vsel %vm838_vm2, %v3541_v58, 0.0 }
 0x517   : > { %1172 = vadd.xlane.f32.xlu1 %v1171_v59  ;;  %v731_v59 = vld [vmem:[%s612_s9] sm:$0xff]  ;;  %s2758_s9 = scalar_lea.sflag [#allocation4], %s4633_s7 }
 0x519   : > { %v3543_v60 = vpop.eup %3542 }
 0x51a   : > { %v1174_v61 = vsel %vm838_vm2, %v3543_v60, 0.0 }
 0x51b   : > { %1175 = vadd.xlane.f32.xlu0 %v1174_v61  ;;  %v1615_v61 = vld [vmem:[#allocation13 + $0x18] sm:$0xff] }
 0x528   : > { %1337 = vrot.lane.b32.xlu1 %v4716_v17, %s4099_s23 }
 0x52c   : > { %1413 = vrot.lane.b32.xlu1 %v4708_v14, %s4099_s23 }
 0x531   : > { %1261 = vrot.lane.b32.xlu0 %v4710_v15, %s4099_s23 }
 0x536   : > { %v1167_v62 = vpop.xlane.xlu1 %1166 }
 0x537   : > { %3544 = vrcp.f32 %v1167_v62 }
 0x541   : > { %v3545_v63 = vpop.eup %3544 }
 0x542   : > { %v1178_v2 = vmul.f32 %v3545_v63, %v3537_v44 }
 0x544   : > { %3182 = vmatmul.mubr.msk.f32.vlgmr.msra.gmra.mrb[2].mxu0 %vm838_vm2, %v1178_v2 }
 0x545   : > { %3191 = vmatprep.mubr.msk.f32.mxu0 %vm4093_vm0, %v4094_v1 }
 0x59f   : > { %v1170_v3 = vpop.xlane.xlu0 %1169 }
 0x5a0   : > { %3546 = vrcp.f32 %v1170_v3 }
 0x5a4   : > { %v1173_v4 = vpop.xlane.xlu1 %1172 }
 0x5a5   : > { %3548 = vrcp.f32 %v1173_v4  ;;  %v1604_v4 = vsub.s32 4, %v4787_v37 }
 0x5a8   : > { %v1338_v5 = vpop.permute.xlu1 %1337  ;;  %v1176_v6 = vpop.xlane.xlu0 %1175 }
 0x5a9   : > { %3550 = vrcp.f32 %v1176_v6  ;;  %3190 = vmatpush3.msra.mxu0 %v1338_v5  ;;  %v1609_v5 = vsub.s32 5, %v4787_v37  ;;  %v1605_v6 = vrot.slane %v4790_v39, %v1604_v4 }
 0x5aa   : > { %v3547_v7 = vpop.eup %3546  ;;  %3319 = vmatprep.subr.bf16.mxu0 %v4092_v0 }
 0x5ab   : > { %v1180_v9 = vmul.f32 %v3547_v7, %v3539_v56  ;;  %v1612_v56 = vld [vmem:[#allocation13] sm:$0xff] }
 0x5ac   : > { %v1262_v10 = vpop.permute.xlu0 %1261  ;;  %v1414_v11 = vpop.permute.xlu1 %1413 }
 0x5ad   : > { %3185 = vmatpush3.msra.mxu1 %v1262_v10  ;;  %v1610_v10 = vrot.slane %v4790_v39, %v1609_v5 }
 0x5ae   : > { %3187 = vmatmul.mubr.msk.f32.vlgmr.msra.gmra.mrb[8].mxu1 %vm838_vm2, %v1180_v9  ;;  %3194 = vmatprep.subr.mxu1 %v4094_v1 }
 0x5af   : > { %v3549_v12 = vpop.eup %3548  ;;  %3195 = vmatpush3.msra.mxu1 %v1414_v11  ;;  %3196 = vmatprep.mubr.msk.f32.mxu1 %vm4093_vm0, %v4094_v1 }
 0x5b0   : > { %v1182_v13 = vmul.f32 %v3549_v12, %v3541_v58  ;;  %3325 = vmatprep.subr.bf16.mxu1 %v4092_v0  ;;  %v3326_v58 = vpack.c.bf16 %v1613_v57, %v1612_v56 }
 0x5b2   : > { %3192 = vmatmul.mubr.msk.f32.vlgmr.msra.gmra.mrb[4].mxu0 %vm838_vm2, %v1182_v13  ;;  %v3055_v13 = vld [vmem:[#allocation16] ss:$0 sm:$0xff] }
 0x5b3   : > { %v3551_v14 = vpop.eup %3550  ;;  %3207 = vmatprep.mubr.msk.f32.mxu0 %vm4093_vm0, %v4094_v1  ;;  %3321 = vmatpush3.bf16.msra.mxu0 %v3320_v20 }
 0x5b4   : > { %v1184_v15 = vmul.f32 %v3551_v14, %v3543_v60  ;;  %3322 = vmatprep.subr.bf16.mxu0 %v4092_v0  ;;  %v1614_v60 = vld [vmem:[#allocation13 + $0x10] sm:$0xff] }
 0x5b5   : > { %v3329_v62 = vpack.c.bf16 %v1615_v61, %v1614_v60 }
 0x5b6   : > { %3197 = vmatmul.mubr.msk.f32.vlgmr.msra.gmra.mrb[10].mxu1 %vm838_vm2, %v1184_v15 }
 0x5b7   : > { %3218 = vmatprep.mubr.msk.f32.mxu1 %vm4093_vm0, %v4094_v1  ;;  %3324 = vmatpush3.bf16.msra.mxu0 %v3323_v23 }
 0x5b8   : > { %3331 = vmatprep.subr.bf16.mxu0 %v4092_v0  ;;  %3327 = vmatpush3.bf16.msra.mxu1 %v3326_v58 }
 0x5b9   : > { %3328 = vmatprep.subr.bf16.mxu1 %v4092_v0 }
 0x5bc   : > { %3330 = vmatpush3.bf16.msra.mxu1 %v3329_v62 }
 0x5bd   : > { %3232 = vmatprep.subr.mxu1 %v4094_v1 }
 0x617   : > { %v1257_v16 = vpop.f32.mrb[2].mxu0 }
 0x618   : > { %v3183_v17 = vpop.f32.mrb[3].mxu0 }
 0x681   : > { %v1333_v24 = vpop.f32.mrb[8].mxu1 }
 0x682   : > { %1490 = vrot.lane.b32.xlu0 %v1333_v24, %s4100_s13  ;;  %v3188_v25 = vpop.f32.mrb[9].mxu1 }
 0x685   : > { %v1409_v26 = vpop.f32.mrb[4].mxu0 }
 0x686   : > { %1494 = vrot.lane.b32.xlu1 %v1409_v26, %s4101_s20  ;;  %v3193_v27 = vpop.f32.mrb[5].mxu0 }
 0x689   : > { %v1485_v28 = vpop.f32.mrb[10].mxu1 }
 0x68a   : > { %1498 = vrot.lane.b32.xlu0 %v1485_v28, %s4102_s2  ;;  %v3198_v29 = vpop.f32.mrb[11].mxu1 }
 0x68b   : > { %v733_v29 = vld [vmem:[%s630_s4] sm:$0xff] }
 0x6f4   : > { %v1491_v30 = vpop.permute.xlu0 %1490 }
 0x6f5   : > { %v1501_v32 = vsel %vm838_vm2, %v1257_v16, %v1491_v30 }
 0x6f8   : > { %v1495_v31 = vpop.permute.xlu1 %1494 }
 0x6f9   : > { %v1503_v33 = vsel %vm1502_vm3, %v1501_v32, %v1495_v31 }
 0x6fc   : > { %v1499_v34 = vpop.permute.xlu0 %1498 }
 0x6fd   : > { %v1505_v35 = vsel %vm1504_vm4, %v1503_v33, %v1499_v34 }
 0x6fe   : > { %3208 = vmatmul.mubr.msk.f32.vlgmr.msra.gmra.mrb[6].mxu0 %vm747_vm1, %v1505_v35 }
 0x6ff   : > { %3229 = vmatprep.mubr.msk.f32.mxu0 %vm4093_vm0, %v4094_v1  ;;  %3333 = vmatpush3.bf16.msra.mxu0 %v3332_v53 }
 0x700   : > { %3334 = vmatprep.subr.bf16.mxu0 %v4092_v0 }
 0x7d1   : > { %v1583_v41 = vpop.f32.mrb[6].mxu0 }
 0x7d2   : > { %v1584_v42 = vadd.f32 %v1583_v41, %v1513_v40  ;;  %v3209_v43 = vpop.f32.mrb[7].mxu0 }
 0x7d4   : > { %v1587_v44 = vadd.f32 %v1584_v42, %v4689_v8  ;;  %v3335_v8 = vpack.c.bf16 %v1697_v55, %v1696_v54 }
 0x7d6   : > { %v1588_v45 = vsel %vm747_vm1, %v1587_v44, 0.0  ;;  %3336 = vmatpush3.bf16.msra.mxu0 %v3335_v8 }
 0x7d7   : > { %1589 = vadd.xlane.f32.xlu1 %v1588_v45  ;;  %3242 = vmatprep.subr.mxu0 %v4094_v1 }
 0x7d9   : > { %3230 = vmatmul.mubr.msk.f32.vlgmr.msra.gmra.mrb[8].mxu0 %vm747_vm1, %v731_v59 }
 0x7da   : > { %3244 = vmatprep.mubr.msk.f32.mxu0 %vm4093_vm0, %v4094_v1 }
 0x864   : > { %v1590_v46 = vpop.xlane.xlu1 %1589 }
 0x865   : > { %v1592_v47 = vmul.f32 0.03125, %v1590_v46 }
 0x867   : > { %v1593_v48 = vsub.f32 %v1587_v44, %v1592_v47 }
 0x869   : > { %v1594_v49 = vmul.f32 %v1593_v48, %v1593_v48 }
 0x86b   : > { %v1595_v50 = vsel %vm747_vm1, %v1594_v49, 0.0 }
 0x86c   : > { %1596 = vadd.xlane.f32.xlu0 %v1595_v50 }
 0x8ac   : > { %v1774_v14 = vpop.f32.mrb[8].mxu0 }
 0x8ad   : > { %v1775_v15 = vadd.f32 %v3055_v13, %v1774_v14  ;;  %v3231_v16 = vpop.f32.mrb[9].mxu0 }
 0x8af   : > { %1786 = vrot.lane.b32.xlu0 %v1775_v15, %s4096_s10  ;;  %1788 = vrot.lane.b32.xlu1 %v1775_v15, %s4098_s29 }
 0x8b3   : > { %1790 = vrot.lane.b32.xlu0 %v1775_v15, %s4095_s28 }
 0x8f9   : > { %v1597_v63 = vpop.xlane.xlu0 %1596 }
 0x8fa   : > { %v1598_v2 = vmul.f32 0.03125, %v1597_v63 }
 0x8fc   : > { %v1599_v3 = vadd.f32 1e-05, %v1598_v2 }
 0x8fe   : > { %3552 = vrsqrt.f32 %v1599_v3 }
 0x908   : > { %v3553_v7 = vpop.eup %3552 }
 0x909   : > { %v1601_v9 = vmul.f32 %v3553_v7, %v1593_v48 }
 0x90b   : > { %v1606_v11 = vmul.f32 %v1605_v6, %v1601_v9 }
 0x90d   : > { %v4811_v12 = vadd.f32 %v1610_v10, %v1606_v11 }
 0x90f   : > { %3219 = vmatmul.mubr.msk.f32.vlgmr.msra.gmra.mrb[12].mxu1 %vm747_vm1, %v4811_v12 }
 0x910   : > { %3234 = vmatprep.mubr.msk.f32.mxu1 %vm4093_vm0, %v4094_v1  ;;  %3233 = vmatpush3.xpose.msk.msra.mxu1 %vm838_vm2, %v1775_v15 }
 0x911   : > { %3237 = vmatprep.subr.mxu1 %v4094_v1 }
 0x921   : > { %v4822_v17 = vpop.permute.xlu1 %1788  ;;  %v1787_v24 = vpop.permute.xlu0 %1786 }
 0x922   : > { %3243 = vmatpush3.xpose.msk.msra.mxu0 %vm838_vm2, %v4822_v17 }
 0x923   : > { %3252 = vmatprep.subr.mxu0 %v4094_v1 }
 0x925   : > { %v4839_v25 = vpop.permute.xlu0 %1790 }
 0x9e2   : > { %v1689_v20 = vpop.f32.mrb[12].mxu1 }
 0x9e3   : > { %v1690_v21 = vadd.f32 %v1689_v20, %v1619_v19  ;;  %v3220_v22 = vpop.f32.mrb[13].mxu1 }
 0x9e5   : > { %v1693_v23 = vmul.f32 0.35355338, %v1690_v21 }
 0x9e7   : > { %1783 = vrot.lane.b32.xlu0 %v1693_v23, %s4095_s28  ;;  %1779 = vrot.lane.b32.xlu1 %v1693_v23, %s4096_s10 }
 0x9e8   : > { %3235 = vmatmul.mubr.msk.f32.vlgmr.msra.gmra.mrb[14].mxu1 %vm838_vm2, %v1693_v23 }
 0x9e9   : > { %3238 = vmatpush3.xpose.msk.msra.mxu1 %vm838_vm2, %v1787_v24  ;;  %3239 = vmatprep.mubr.msk.f32.mxu1 %vm4093_vm0, %v4094_v1 }
 0x9ea   : > { %3247 = vmatprep.subr.mxu1 %v4094_v1 }
 0x9eb   : > { %1781 = vrot.lane.b32.xlu1 %v1693_v23, %s4098_s29 }
 0xa59   : > { %v1780_v26 = vpop.permute.xlu1 %1779  ;;  %v1784_v27 = vpop.permute.xlu0 %1783 }
 0xa5a   : > { %3240 = vmatmul.mubr.msk.f32.vlgmr.msra.gmra.mrb[16].mxu1 %vm838_vm2, %v1780_v26  ;;  %v2453_v26 = vld [vmem:[#allocation17 + $0x28] sm:$0xff] }
 0xa5b   : > { %3248 = vmatpush3.xpose.msk.msra.mxu1 %vm838_vm2, %v4839_v25  ;;  %3249 = vmatprep.mubr.msk.f32.mxu1 %vm4093_vm0, %v4094_v1 }
 0xa5c   : > { %3257 = vmatprep.subr.mxu1 %v4094_v1 }
 0xa5d   : > { %v1782_v28 = vpop.permute.xlu1 %1781 }
 0xa5e   : > { %3245 = vmatmul.mubr.msk.f32.vlgmr.msra.gmra.mrb[10].mxu0 %vm838_vm2, %v1782_v28  ;;  %3250 = vmatmul.mubr.msk.f32.vlgmr.msra.gmra.mrb[18].mxu1 %vm838_vm2, %v1784_v27 }
 0xa5f   : > { %3254 = vmatprep.mubr.msk.f32.mxu0 %vm4093_vm0, %v4094_v1  ;;  %3259 = vmatprep.mubr.msk.f32.mxu1 %vm4093_vm0, %v4094_v1 }
 0xabb   : > { %v1862_v30 = vpop.f32.mrb[14].mxu1 }
 0xabc   : > { %v1863_v31 = vadd.f32 %v1862_v30, %v733_v29  ;;  %v3236_v32 = vpop.f32.mrb[15].mxu1  ;;  %v2454_v30 = vld [vmem:[#allocation17 + $0x30] sm:$0xff] }
 0xabe   : > { %v2088_v33 = vsel %vm838_vm2, %v1863_v31, -inf }
 0xabf   : > { %2089 = vmax.xlane.f32.xlu1 %v2088_v33 }
 0xb2d   : > { %v1936_v34 = vpop.f32.mrb[16].mxu1 }
 0xb2e   : > { %v1937_v35 = vadd.f32 %v1936_v34, %v733_v29  ;;  %v3241_v36 = vpop.f32.mrb[17].mxu1 }
 0xb30   : > { %v2091_v40 = vsel %vm838_vm2, %v1937_v35, -inf }
 0xb31   : > { %v2010_v41 = vpop.f32.mrb[10].mxu0  ;;  %2092 = vmax.xlane.f32.xlu0 %v2091_v40  ;;  %v2084_v42 = vpop.f32.mrb[18].mxu1 }
 0xb32   : > { %v2011_v43 = vadd.f32 %v2010_v41, %v733_v29  ;;  %v2085_v44 = vadd.f32 %v2084_v42, %v733_v29  ;;  %v3246_v45 = vpop.f32.mrb[11].mxu0  ;;  %v3251_v46 = vpop.f32.mrb[19].mxu1 }
 0xb34   : > { %v2094_v47 = vsel %vm838_vm2, %v2011_v43, -inf  ;;  %v2097_v48 = vsel %vm838_vm2, %v2085_v44, -inf }
 0xb35   : > { %2095 = vmax.xlane.f32.xlu0 %v2094_v47  ;;  %2098 = vmax.xlane.f32.xlu1 %v2097_v48  ;;  %v2458_v48 = vsub.s32 2, %v4787_v37 }
 0xb46   : > { %2208 = vrot.lane.b32.xlu1 %v1787_v24, %s4097_s8 }
 0xb4b   : > { %2132 = vrot.lane.b32.xlu0 %v1775_v15, %s4097_s8 }
 0xb4c   : > { %v2090_v49 = vpop.xlane.xlu1 %2089 }
 0xb4d   : > { %v2100_v50 = vsub.f32 %v1863_v31, %v2090_v49  ;;  %v2455_v31 = vld [vmem:[#allocation17 + $0x38] sm:$0xff]  ;;  %v2459_v49 = vrot.slane %v4790_v39, %v2458_v48 }
 0xb4e   : > { %v3341_v32 = vpack.c.bf16 %v2455_v31, %v2454_v30 }
 0xb4f   : > { %v2104_v51 = vmul.f32 1.442695, %v2100_v50 }
 0xb51   : > { %3554 = vpow2.f32 %v2104_v51 }
 0xb5b   : > { %v3555_v52 = vpop.eup %3554 }
 0xb5c   : > { %v2112_v53 = vsel %vm838_vm2, %v3555_v52, 0.0 }
 0xb6a   : > { %2113 = vadd.xlane.f32.xlu0 %v2112_v53 }
 0xbbe   : > { %v2093_v54 = vpop.xlane.xlu0 %2092 }
 0xbbf   : > { %v2101_v55 = vsub.f32 %v1937_v35, %v2093_v54 }
 0xbc1   : > { %v2106_v8 = vmul.f32 1.442695, %v2101_v55 }
 0xbc2   : > { %v2096_v56 = vpop.xlane.xlu0 %2095  ;;  %v2099_v57 = vpop.xlane.xlu1 %2098 }
 0xbc3   : > { %3556 = vpow2.f32 %v2106_v8  ;;  %v2102_v58 = vsub.f32 %v2011_v43, %v2096_v56  ;;  %v2103_v59 = vsub.f32 %v2085_v44, %v2099_v57 }
 0xbc5   : > { %v2108_v60 = vmul.f32 1.442695, %v2102_v58  ;;  %v2110_v61 = vmul.f32 1.442695, %v2103_v59  ;;  %v2558_v59 = vld [vmem:[#allocation19 + $0x8] sm:$0xff] }
 0xbc6   : > { %v2133_v62 = vpop.permute.xlu0 %2132  ;;  %v2209_v63 = vpop.permute.xlu1 %2208 }
 0xbc7   : > { %3558 = vpow2.f32 %v2108_v60  ;;  %3253 = vmatpush3.msra.mxu0 %v2133_v62  ;;  %3258 = vmatpush3.msra.mxu1 %v2209_v63  ;;  %v2560_v62 = vld [vmem:[#allocation19 + $0x18] sm:$0xff] }
 0xbc8   : > { %3560 = vpow2.f32 %v2110_v61  ;;  %3262 = vmatprep.subr.mxu0 %v4094_v1  ;;  %3267 = vmatprep.subr.mxu1 %v4094_v1  ;;  %v2559_v61 = vld [vmem:[#allocation19 + $0x10] sm:$0xff] }
 0xbc9   : > { %v3347_v63 = vpack.c.bf16 %v2560_v62, %v2559_v61 }
 0xbcd   : > { %v3557_v2 = vpop.eup %3556 }
 0xbce   : > { %v2115_v3 = vsel %vm838_vm2, %v3557_v2, 0.0 }
 0xbcf   : > { %2116 = vadd.xlane.f32.xlu1 %v2115_v3 }
 0xbd1   : > { %v3559_v4 = vpop.eup %3558 }
 0xbd2   : > { %v3561_v5 = vpop.eup %3560  ;;  %v2118_v6 = vsel %vm838_vm2, %v3559_v4, 0.0 }
 0xbd3   : > { %2119 = vadd.xlane.f32.xlu0 %v2118_v6  ;;  %v2121_v7 = vsel %vm838_vm2, %v3561_v5, 0.0 }
 0xbd4   : > { %2122 = vadd.xlane.f32.xlu1 %v2121_v7 }
 0xbe5   : > { %2284 = vrot.lane.b32.xlu1 %v4822_v17, %s4097_s8 }
 0xbe9   : > { %2360 = vrot.lane.b32.xlu0 %v4839_v25, %s4097_s8  ;;  %v2452_v25 = vld [vmem:[#allocation17 + $0x20] sm:$0xff] }
 0xbea   : > { %v3338_v27 = vpack.c.bf16 %v2453_v26, %v2452_v25  ;;  %v2653_v25 = vld [vmem:[#allocation22 + $0x38] sm:$0xff] }
 0xbf7   : > { %v2114_v9 = vpop.xlane.xlu0 %2113 }
 0xbf8   : > { %3562 = vrcp.f32 %v2114_v9 }
 0xc02   : > { %v3563_v10 = vpop.eup %3562 }
 0xc03   : > { %v2125_v11 = vmul.f32 %v3563_v10, %v3555_v52 }
 0xc05   : > { %3255 = vmatmul.mubr.msk.f32.vlgmr.msra.gmra.mrb[12].mxu0 %vm838_vm2, %v2125_v11 }
 0xc06   : > { %3264 = vmatprep.mubr.msk.f32.mxu0 %vm4093_vm0, %v4094_v1 }
 0xc5c   : > { %v2117_v13 = vpop.xlane.xlu1 %2116 }
 0xc5d   : > { %3564 = vrcp.f32 %v2117_v13 }
 0xc60   : > { %v2120_v14 = vpop.xlane.xlu0 %2119 }
 0xc61   : > { %3566 = vrcp.f32 %v2120_v14  ;;  %v2123_v15 = vpop.xlane.xlu1 %2122  ;;  %v2646_v14 = vld [vmem:[#allocation22] sm:$0xff] }
 0xc62   : > { %3568 = vrcp.f32 %v2123_v15  ;;  %v2647_v15 = vld [vmem:[#allocation22 + $0x8] sm:$0xff] }
 0xc64   : > { %v2361_v20 = vpop.permute.xlu0 %2360 }
 0xc65   : > { %v2285_v16 = vpop.permute.xlu1 %2284 }
 0xc66   : > { %3263 = vmatpush3.msra.mxu0 %v2285_v16  ;;  %v3350_v16 = vpack.c.bf16 %v2647_v15, %v2646_v14 }
 0xc67   : > { %v3565_v17 = vpop.eup %3564  ;;  %3337 = vmatprep.subr.bf16.mxu0 %v4092_v0 }
 0xc68   : > { %v2127_v19 = vmul.f32 %v3565_v17, %v3557_v2  ;;  %v2648_v17 = vld [vmem:[#allocation22 + $0x10] sm:$0xff] }
 0xc6a   : > { %3260 = vmatmul.mubr.msk.f32.vlgmr.msra.gmra.mrb[20].mxu1 %vm838_vm2, %v2127_v19  ;;  %v2649_v19 = vld [vmem:[#allocation22 + $0x18] sm:$0xff] }
 0xc6b   : > { %v3567_v21 = vpop.eup %3566  ;;  %3268 = vmatpush3.msra.mxu1 %v2361_v20  ;;  %3269 = vmatprep.mubr.msk.f32.mxu1 %vm4093_vm0, %v4094_v1  ;;  %v3353_v20 = vpack.c.bf16 %v2649_v19, %v2648_v17 }
 0xc6c   : > { %v3569_v22 = vpop.eup %3568  ;;  %v2129_v23 = vmul.f32 %v3567_v21, %v3559_v4  ;;  %3343 = vmatprep.subr.bf16.mxu1 %v4092_v0  ;;  %v2549_v4 = vsub.s32 6, %v4787_v37  ;;  %v2650_v21 = vld [vmem:[#allocation22 + $0x20] sm:$0xff] }
 0xc6d   : > { %v2131_v24 = vmul.f32 %v3569_v22, %v3561_v5  ;;  %v2554_v5 = vsub.s32 7, %v4787_v37  ;;  %v2651_v22 = vld [vmem:[#allocation22 + $0x28] sm:$0xff] }
 0xc6e   : > { %3265 = vmatmul.mubr.msk.f32.vlgmr.msra.gmra.mrb[14].mxu0 %vm838_vm2, %v2129_v23  ;;  %v2550_v6 = vrot.slane %v4790_v39, %v2549_v4  ;;  %v3356_v23 = vpack.c.bf16 %v2651_v22, %v2650_v21 }
 0xc6f   : > { %3270 = vmatmul.mubr.msk.f32.vlgmr.msra.gmra.mrb[22].mxu1 %vm838_vm2, %v2131_v24  ;;  %3280 = vmatprep.mubr.msk.f32.mxu0 %vm4093_vm0, %v4094_v1  ;;  %v2555_v10 = vrot.slane %v4790_v39, %v2554_v5  ;;  %v2652_v24 = vld [vmem:[#allocation22 + $0x30] sm:$0xff] }
 0xc70   : > { %3291 = vmatprep.mubr.msk.f32.mxu1 %vm4093_vm0, %v4094_v1  ;;  %3339 = vmatpush3.bf16.msra.mxu0 %v3338_v27  ;;  %v3359_v26 = vpack.c.bf16 %v2653_v25, %v2652_v24  ;;  %v3070_v27 = vld [vmem:[#allocation20] ss:$0 sm:$0xff] }
 0xc71   : > { %3340 = vmatprep.subr.bf16.mxu0 %v4092_v0 }
 0xc74   : > { %3342 = vmatpush3.bf16.msra.mxu0 %v3341_v32 }
 0xc75   : > { %3349 = vmatprep.subr.bf16.mxu0 %v4092_v0 }
 0xcd8   : > { %v2204_v28 = vpop.f32.mrb[12].mxu0 }
 0xcd9   : > { %v3256_v29 = vpop.f32.mrb[13].mxu0 }
 0xd3d   : > { %v2280_v33 = vpop.f32.mrb[20].mxu1 }
 0xd3e   : > { %2437 = vrot.lane.b32.xlu1 %v2280_v33, %s4100_s13  ;;  %v3261_v34 = vpop.f32.mrb[21].mxu1 }
 0xd41   : > { %v2356_v35 = vpop.f32.mrb[14].mxu0 }
 0xd42   : > { %v2432_v36 = vpop.f32.mrb[22].mxu1  ;;  %2441 = vrot.lane.b32.xlu0 %v2356_v35, %s4101_s20  ;;  %v3266_v40 = vpop.f32.mrb[15].mxu0 }
 0xd43   : > { %2445 = vrot.lane.b32.xlu1 %v2432_v36, %s4102_s2  ;;  %v3271_v41 = vpop.f32.mrb[23].mxu1  ;;  %v2656_v36 = vsub.s32 3, %v4787_v37 }
 0xdb0   : > { %v2438_v42 = vpop.permute.xlu1 %2437 }
 0xdb1   : > { %v2448_v43 = vsel %vm838_vm2, %v2204_v28, %v2438_v42 }
 0xdb4   : > { %v2442_v44 = vpop.permute.xlu0 %2441 }
 0xdb5   : > { %v2449_v45 = vsel %vm1502_vm3, %v2448_v43, %v2442_v44  ;;  %v2446_v46 = vpop.permute.xlu1 %2445 }
 0xdb6   : > { %v2450_v47 = vsel %vm1504_vm4, %v2449_v45, %v2446_v46 }
 0xdb7   : > { %3281 = vmatmul.mubr.msk.f32.vlgmr.msra.gmra.mrb[16].mxu0 %vm747_vm1, %v2450_v47 }
 0xdb8   : > { %3310 = vmatprep.mubr.msk.f32.mxu0 %vm4093_vm0, %v4094_v1  ;;  %v2557_v1 = vld [vmem:[#allocation19] sm:$0xff]  ;;  %3351 = vmatpush3.bf16.msra.mxu0 %v3350_v16 }
 0xdb9   : > { %v3344_v60 = vpack.c.bf16 %v2558_v59, %v2557_v1  ;;  %3352 = vmatprep.subr.bf16.mxu0 %v4092_v0 }
 0xdbb   : > { %3345 = vmatpush3.bf16.msra.mxu1 %v3344_v60 }
 0xdbc   : > { %3346 = vmatprep.subr.bf16.mxu1 %v4092_v0  ;;  %3354 = vmatpush3.bf16.msra.mxu0 %v3353_v20 }
 0xdbd   : > { %3355 = vmatprep.subr.bf16.mxu0 %v4092_v0 }
 0xdbf   : > { %3348 = vmatpush3.bf16.msra.mxu1 %v3347_v63 }
 0xdc0   : > { %3357 = vmatpush3.bf16.msra.mxu0 %v3356_v23 }
 0xdc1   : > { %3358 = vmatprep.subr.bf16.mxu0 %v4092_v0  ;;  %v2657_v0 = vrot.slane %v4790_v39, %v2656_v36 }
 0xdc4   : > { %3360 = vmatpush3.bf16.msra.mxu0 %v3359_v26 }
 0xe8a   : > { %v2529_v50 = vpop.f32.mrb[16].mxu0 }
 0xe8b   : > { %v2530_v51 = vadd.f32 %v2529_v50, %v2459_v49  ;;  %v3282_v52 = vpop.f32.mrb[17].mxu0 }
 0xe8c   : > { %v735_v52 = vld [vmem:[#allocation23 + $0x8] sm:$0x3] }
 0xe8d   : > { %v2533_v53 = vadd.f32 %v2530_v51, %v4811_v12 }
 0xe8f   : > { %v2534_v54 = vsel %vm747_vm1, %v2533_v53, 0.0 }
 0xe90   : > { %2535 = vadd.xlane.f32.xlu0 %v2534_v54 }
 0xf1d   : > { %v2536_v55 = vpop.xlane.xlu0 %2535 }
 0xf1e   : > { %v2537_v8 = vmul.f32 0.03125, %v2536_v55  ;;  %v2754_v55 = vrot.slane %v735_v52, %v1512_v38 }
 0xf20   : > { %v2538_v56 = vsub.f32 %v2533_v53, %v2537_v8  ;;  %v2749_v53 = vrot.slane %v735_v52, %v1618_v18 }
 0xf22   : > { %v2539_v57 = vmul.f32 %v2538_v56, %v2538_v56 }
 0xf24   : > { %v2540_v58 = vsel %vm747_vm1, %v2539_v57, 0.0 }
 0xf25   : > { %2541 = vadd.xlane.f32.xlu1 %v2540_v58 }
 0xfb2   : > { %v2542_v12 = vpop.xlane.xlu1 %2541 }
 0xfb3   : > { %v2543_v2 = vmul.f32 0.03125, %v2542_v12 }
 0xfb5   : > { %v2544_v3 = vadd.f32 1e-05, %v2543_v2 }
 0xfb7   : > { %3570 = vrsqrt.f32 %v2544_v3 }
 0xfc1   : > { %v3571_v7 = vpop.eup %3570 }
 0xfc2   : > { %v2546_v9 = vmul.f32 %v3571_v7, %v2538_v56 }
 0xfc4   : > { %v2551_v11 = vmul.f32 %v2550_v6, %v2546_v9 }
 0xfc6   : > { %v2556_v13 = vadd.f32 %v2555_v10, %v2551_v11 }
 0xfc8   : > { %3292 = vmatmul.mubr.msk.f32.vlgmr.msra.gmra.mrb[24].mxu1 %vm747_vm1, %v2556_v13 }
0x109b   : > { %v2637_v28 = vpop.f32.mrb[24].mxu1 }
0x109c   : > { %v2638_v29 = vadd.f32 %v3070_v27, %v2637_v28  ;;  %v3293_v30 = vpop.f32.mrb[25].mxu1 }
0x109e   : > { %v2642_v31 = vmul.f32 0.70710677, %v2638_v29  ;;  %v2641_v33 = vmul.f32 0.5, %v2638_v29 }
0x10a0   : > { %3572 = verf.f32 %v2642_v31 }
0x10aa   : > { %v3573_v32 = vpop.eup %3572 }
0x10ab   : > { %v2644_v34 = vadd.f32 1.0, %v3573_v32 }
0x10ad   : > { %v2645_v35 = vmul.f32 %v2644_v34, %v2641_v33 }
0x10af   : > { %3311 = vmatmul.mubr.msk.f32.vlgmr.msra.gmra.mrb[18].mxu0 %vm2658_vm5, %v2645_v35 }
0x1182   : > { %v2728_v40 = vpop.f32.mrb[18].mxu0 }
0x1183   : > { %v2729_v41 = vadd.f32 %v2728_v40, %v2657_v0  ;;  %v3312_v42 = vpop.f32.mrb[19].mxu0 }
0x1185   : > { %v2732_v43 = vadd.f32 %v2729_v41, %v2556_v13 }
0x1187   : > { %v2733_v44 = vsel %vm747_vm1, %v2732_v43, 0.0 }
0x1188   : > { %2734 = vadd.xlane.f32.xlu0 %v2733_v44 }
0x1215   : > { %v2735_v45 = vpop.xlane.xlu0 %2734 }
0x1216   : > { %v2736_v46 = vmul.f32 0.03125, %v2735_v45 }
0x1218   : > { %v2737_v47 = vsub.f32 %v2732_v43, %v2736_v46 }
0x121a   : > { %v2738_v48 = vmul.f32 %v2737_v47, %v2737_v47 }
0x121c   : > { %v2739_v49 = vsel %vm747_vm1, %v2738_v48, 0.0 }
0x121d   : > { %2740 = vadd.xlane.f32.xlu0 %v2739_v49 }
0x12aa   : > { %v2741_v50 = vpop.xlane.xlu0 %2740 }
0x12ab   : > { %v2742_v51 = vmul.f32 0.03125, %v2741_v50 }
0x12ad   : > { %v2743_v39 = vadd.f32 1e-05, %v2742_v51 }
0x12af   : > { %3574 = vrsqrt.f32 %v2743_v39 }
0x12b9   : > { %v3575_v54 = vpop.eup %3574 }
0x12ba   : > { %v2745_v8 = vmul.f32 %v3575_v54, %v2737_v47 }
0x12bc   : > { %v2750_v56 = vmul.f32 %v2749_v53, %v2745_v8 }
0x12be   : > { %v2755_v57 = vadd.f32 %v2754_v55, %v2750_v56 }
0x12c0   : > { %2756 = vst.msk [vmem:[%s729_s22] sm:$0xff] %vm747_vm1, %v2755_v57 }
0x12c1   : > { %3989 = shalt.err (!%p3986_p12)
}
0x12c2   : > { %s3990_s7 = scalar_lea.hbm %s4923_s24, 128  ;;  %s3994_s10 = scalar_lea.hbm %s5077_s25, 256 }
0x12c3   : > { %p3991_p2 = scmp.ne.s32.totalorder %s4923_s24, %s3990_s7  ;;  %p3995_p10 = scmp.lt.u32.totalorder %s4923_s24, %s5077_s25 }
0x12c4   : > { %p3996_p5 = scmp.lt.u32.totalorder %s3994_s10, %s3990_s7  ;;  %p3998_p0 = scmp.lt.u32.totalorder %s3990_s7, %s4923_s24 }
0x12c5   : > { %p3992_p1 = pnand %p3991_p2, %p5078_p3 }
0x12c6   : > { %p3997_p7 = por %p3996_p5, %p3995_p10 }
0x12c7   : > { %p3993_p4 = pneg %p3992_p1 }
0x12c8   : > { %p3999_p11 = por %p3998_p0, %p3997_p7 }
0x12ca   : > { %p4000_p9 = pnand %p3999_p11, %p3993_p4 }
0x12cc   : > { %4003 = shalt.err (!%p4000_p9)
}
0x12cd   : > { %3409 = dma.vmem_to_hbm [thread:$0]  (%p5078_p3), %s4925_s3, 128, %s4923_s24, %s2758_s9  }
0x12ce PF: > { %s5079_s23 = sld [smem:[#allocation36_spill]]  ;;  %s5080_s13 = sld [smem:[#allocation40_spill]] }
0x12cf   : > { %p5082_p13 = scmp.ge.s32.totalorder %s4074_s16, 2 }
0x12d4   : > { %s2783_s20 = sand.u32 1, %s5079_s23   ;;  %p5081_p8 = scmp.ne.s32.totalorder %s5080_s13, 0 }
0x12d5   : > { %s2784_s2 = scalar_lea.sflag [#allocation4], %s2783_s20 }
0x12d6   : > { %p3456_p6 = pnand %p5082_p13, %p5081_p8 }
0x12d8   : > { %4057 = dma.done.wait (!%p3456_p6), %s2784_s2, 128  }
0x12d9   : > { %4059 = vsyncadd (!%p3456_p6), %s2784_s2, 4294967168  ;;  %s5083_s16 = sld [smem:[#allocation38_spill]]  ;;  %s5084_s17 = sld [smem:[#allocation39_spill]] }
0x12da   : > { %s5085_s29 = smov %s4066_s30  ;;  %s5086_s30 = smov %s4070_s15 }
0x12df   : > { %p38_p12 = scmp.ge.s32.totalorder %s5083_s16, 4   ;;  %s5087_s15 = smov %s5084_s17 }
0x12e1   :  { %40 = sbr.rel (!%p38_p12) target bundleno = 29 (0x1d), region = 199 }
0x12e8   :  { %2789 = vsyncpa [#allocation3], 1 }
0x12e9   :  { %2791 = vsyncpa [#allocation3 + $0x1], 1 }
0x12ea   :  { %2792 = vsyncpa [#allocation6], 1 }
0x12eb   :  { %2794 = vsyncpa [#allocation6 + $0x1], 1 }
0x12ec   :  { %2795 = vsyncpa [#allocation9], 1 }
0x12ed   :  { %2797 = vsyncpa [#allocation9 + $0x1], 1 }
0x12ee   :  { %2798 = vsyncpa [#allocation12], 1 }
0x12ef   :  { %2799 = vsyncpa [#allocation15], 1 }
0x12f0   :  { %2800 = vsyncpa [#allocation18], 1 }
0x12f1   :  { %2801 = vsyncpa [#allocation21], 1 }
0x12f2   :  { %2802 = vsyncpa [#allocation24], 1 }
0x12f3   :  { %2803 = vsyncpa [#allocation4], 1 }
0x12f4   :  { %2805 = vsyncpa [#allocation4 + $0x1], 1 }

</bundles_post_ra>
